<compile_context>
chip_gen: v6e
topology: v6e:2x2x1
jax: 0.10.0
libtpu: 0.0.40
codegen_flags: <defaults>
</compile_context>

<pallas_src>
import functools

import jax
import jax.numpy as jnp
from jax import lax
from jax.experimental import pallas as pl
from jax.experimental.pallas import tpu as pltpu


def _attention_kernel(x_ref, wqkv_ref, bqkv_ref, wout_ref, bout_ref, o_ref,
                      q_scr, k_scr, v_scr, out_scr,
                      *, heads, dim_head, scale, q_tile, n_inner,
                      n_valid, n_pad, mxu_dtype):
    needs_mask = n_pad != n_valid

    # ---- per-(batch, q_outer) preamble: per-head qkv projection + L2 norm ---
    # F.normalize(dim=-1) on (b, h, d, N) normalizes every channel row over
    # the FULL token axis, so it must happen before query tiling.
    @pl.when(pl.program_id(2) == 0)
    def _():
        x = x_ref[0]                                        # (C, Npad) bf16
        if needs_mask:
            valid = lax.broadcasted_iota(
                jnp.int32, (dim_head, n_pad), 1) < n_valid
        for h in range(heads):                              # small static loop
            q_h = jnp.dot(wqkv_ref[0, h], x,
                          preferred_element_type=jnp.float32) + bqkv_ref[0, h]
            k_h = jnp.dot(wqkv_ref[1, h], x,
                          preferred_element_type=jnp.float32) + bqkv_ref[1, h]
            v_h = jnp.dot(wqkv_ref[2, h], x,
                          preferred_element_type=jnp.float32) + bqkv_ref[2, h]
            if needs_mask:
                # padded x columns are zero, but the bias makes the projected
                # padded columns non-zero -> zero them before the norms.
                q_h = jnp.where(valid, q_h, 0.0)
                k_h = jnp.where(valid, k_h, 0.0)
            # 1/max(||.||, 1e-12) == rsqrt(max(||.||^2, 1e-24))   (EUP)
            inv_q = lax.rsqrt(jnp.maximum(
                jnp.sum(q_h * q_h, axis=-1, keepdims=True), 1e-24))
            inv_k = lax.rsqrt(jnp.maximum(
                jnp.sum(k_h * k_h, axis=-1, keepdims=True), 1e-24))
            # fold the attention scale into q (O(C*N), not O(N^2))
            q_scr[h] = (q_h * (inv_q * scale)).astype(mxu_dtype)
            k_scr[h] = (k_h * inv_k).astype(mxu_dtype)
            v_scr[h] = v_h.astype(mxu_dtype)

    # ---- attention for this query tile (heads looped -> small live f32) ----
    j = pl.program_id(1) * n_inner + pl.program_id(2)
    q0 = pl.multiple_of(j * q_tile, q_tile)

    if needs_mask:
        key_bias = jnp.where(
            lax.broadcasted_iota(jnp.int32, (1, n_pad), 1) < n_valid,
            0.0, -1e30)

    for h in range(heads):
        q_t = q_scr[h, :, pl.ds(q0, q_tile)]                # (dh, tq) bf16
        k_h = k_scr[h]                                      # (dh, Npad) bf16
        # sim[i, j] = sum_d q_t[d, i] * k[d, j]
        sim = lax.dot_general(q_t, k_h, (((0,), (0,)), ((), ())),
                              preferred_element_type=jnp.float32)  # (tq, Npad)
        if needs_mask:
            sim = sim + key_bias
        # softmax over keys, in f32 (exp on EUP, approx reciprocal on EUP)
        sim = sim - jnp.max(sim, axis=-1, keepdims=True)
        p = jnp.exp(sim)
        attn = (p * pl.reciprocal(jnp.sum(p, axis=-1, keepdims=True),
                                  approx=True)).astype(mxu_dtype)
        # out[d, i] = sum_j v[d, j] * attn[i, j]   (NT matmul)
        out_h = lax.dot_general(v_scr[h], attn, (((1,), (1,)), ((), ())),
                                preferred_element_type=jnp.float32)  # (dh, tq)
        # assemble channel rows h*dh .. (h+1)*dh-1 of the (C, tq) block
        out_scr[h * dim_head:(h + 1) * dim_head, :] = out_h

    # fused output 1x1x1 conv: single MXU matmul contracting the full C axis.
    y = jnp.dot(wout_ref[...], out_scr[...].astype(mxu_dtype),
                preferred_element_type=jnp.float32) + bout_ref[...]
    o_ref[0] = y.astype(o_ref.dtype)


def _round_up(x, m):
    return (x + m - 1) // m * m


def _plan_tiles(c, heads, dh, n_pad, out_itemsize, mxu_itemsize):
    """Pick the query-tile size and vmem limit from the chip's VMEM size."""
    try:
        vmem_cap = int(pltpu.get_tpu_info().vmem_capacity_bytes)
    except Exception:
        vmem_cap = 64 << 20          # conservative fallback (v7x per-TC VMEM)

    pack = (4 // mxu_itemsize) * 8   # sublane packing: 8 for f32, 16 for bf16
    dh_p = _round_up(dh, pack)       # honest bf16 sublane-padding accounting
    c_p = _round_up(c, 8)

    fixed = (2 * c * n_pad * mxu_itemsize                 # x block (2x buffered)
             + 2 * 4 * c * c * mxu_itemsize               # wqkv + wout weights
             + 2 * 4 * c * 4 * 128                        # biases (lane padded)
             + 3 * heads * dh_p * n_pad * mxu_itemsize)   # q/k/v scratch

    def per_tile(t):
        return (2 * c * t * out_itemsize                  # out block (2x buffered)
                + c_p * t * 4                             # (C, tq) f32 assembly
                + 4 * t * n_pad * 4                       # live f32 softmax blocks
                + 3 * dh_p * n_pad * 4)                   # preamble f32 per-head

    budget = int(vmem_cap * 0.8)
    tq = 128
    t = 256
    while t <= min(n_pad, 2048):
        if n_pad % t == 0 and fixed + per_tile(t) <= budget:
            tq = t
        t += 128
    # TODO(synk): if even tq=128 exceeds `budget` (huge N), switch to the
    # K/V-streaming flash path instead of relying on spilling.
    est = fixed + per_tile(tq)
    vmem_limit = int(min(max(est * 3 // 2, 32 << 20), int(vmem_cap * 0.9)))
    return tq, vmem_limit


def attention_pallas(x, w_qkv, b_qkv, w_out, b_out, *, heads=4, scale=10.0,
                     mxu_dtype=jnp.bfloat16):
    """x: (b, c, X, Y, Z) float32 (NCDHW, like the PyTorch module)."""
    b, c, X, Y, Z = x.shape
    N = X * Y * Z
    assert c % heads == 0
    dh = c // heads
    out_dtype = x.dtype

    # Channels on sublanes, tokens on lanes; pad tokens to a multiple of 128.
    n_pad = _round_up(N, 128)
    x_flat = x.reshape(b, c, N)
    if n_pad != N:
        x_flat = jnp.pad(x_flat, ((0, 0), (0, 0), (0, n_pad - N)))
    x_flat = x_flat.astype(mxu_dtype)                       # pre-cast: 2x less DMA

    # Conv3d weights: (O, I, 1, 1, 1).  Arrange qkv per (part, head, dh, C).
    wqkv = w_qkv.reshape(3, heads, dh, c).astype(mxu_dtype)
    bqkv = b_qkv.reshape(3, heads, dh, 1).astype(jnp.float32)
    wout = w_out.reshape(c, c).astype(mxu_dtype)
    bout = b_out.reshape(c, 1).astype(jnp.float32)

    tq, vmem_limit = _plan_tiles(c, heads, dh, n_pad,
                                 jnp.dtype(out_dtype).itemsize,
                                 jnp.dtype(mxu_dtype).itemsize)
    nq = n_pad // tq
    # v7x has 2 TensorCores; when batch alone cannot feed both, split the
    # q-tile axis into (parallel outer, arbitrary inner).
    q_outer = 2 if (b == 1 and nq % 2 == 0) else 1
    n_inner = nq // q_outer

    kernel = functools.partial(
        _attention_kernel, heads=heads, dim_head=dh, scale=float(scale),
        q_tile=tq, n_inner=n_inner, n_valid=N, n_pad=n_pad,
        mxu_dtype=mxu_dtype)

    out_flat = pl.pallas_call(
        kernel,
        out_shape=jax.ShapeDtypeStruct((b, c, n_pad), out_dtype),
        grid_spec=pltpu.PrefetchScalarGridSpec(
            num_scalar_prefetch=0,
            grid=(b, q_outer, n_inner),
            in_specs=[
                pl.BlockSpec((1, c, n_pad), lambda i, jo, ji: (i, 0, 0)),
                pl.BlockSpec((3, heads, dh, c), lambda i, jo, ji: (0, 0, 0, 0)),
                pl.BlockSpec((3, heads, dh, 1), lambda i, jo, ji: (0, 0, 0, 0)),
                pl.BlockSpec((c, c), lambda i, jo, ji: (0, 0)),
                pl.BlockSpec((c, 1), lambda i, jo, ji: (0, 0)),
            ],
            out_specs=pl.BlockSpec(
                (1, c, tq), lambda i, jo, ji: (i, 0, jo * n_inner + ji)),
            scratch_shapes=[
                pltpu.VMEM((heads, dh, n_pad), mxu_dtype),   # q (normed * scale)
                pltpu.VMEM((heads, dh, n_pad), mxu_dtype),   # k (normed)
                pltpu.VMEM((heads, dh, n_pad), mxu_dtype),   # v
                pltpu.VMEM((c, tq), jnp.float32),            # assembled PV block
            ],
        ),
        compiler_params=pltpu.CompilerParams(
            dimension_semantics=("parallel", "parallel", "arbitrary"),
            vmem_limit_bytes=vmem_limit),
    )(x_flat, wqkv, bqkv, wout, bout)

    out_flat = out_flat[:, :, :N]
    return out_flat.reshape(b, c, X, Y, Z)


def attention_ref(x, w_qkv, b_qkv, w_out, b_out, *, heads=4, scale=10.0):
    """Pure-JAX reference mirroring the PyTorch forward exactly (f32)."""
    b, c, X, Y, Z = x.shape
    N = X * Y * Z
    xf = x.reshape(b, c, N)
    qkv = jnp.einsum('oc,bcn->bon', w_qkv.reshape(3 * c, c), xf) \
        + b_qkv[None, :, None]
    q, k, v = jnp.split(qkv, 3, axis=1)
    dh = c // heads
    q, k, v = (t.reshape(b, heads, dh, N) for t in (q, k, v))

    def l2n(t):
        return t / jnp.maximum(
            jnp.sqrt(jnp.sum(t * t, axis=-1, keepdims=True)), 1e-12)

    q, k = l2n(q), l2n(k)
    sim = jnp.einsum('bhdi,bhdj->bhij', q, k) * scale
    attn = jax.nn.softmax(sim, axis=-1)
    out = jnp.einsum('bhij,bhdj->bhid', attn, v)             # (b, h, N, d)
    out = jnp.transpose(out, (0, 1, 3, 2)).reshape(b, c, N)  # b (h d) n
    y = jnp.einsum('oc,bcn->bon', w_out.reshape(c, c), out) \
        + b_out[None, :, None]
    return y.reshape(b, c, X, Y, Z)


if __name__ == "__main__":
    B, C, X, Y, Z = 2, 8, 4, 4, 4        # dim=8, heads=4 -> dim_head=2, N=64
    HEADS, SCALE = 4, 10.0

    key = jax.random.PRNGKey(0)
    kx, k1, k2, k3, k4 = jax.random.split(key, 5)

    x = jax.random.normal(kx, (B, C, X, Y, Z), dtype=jnp.float32)
    # Conv3d(dim, dim*3, kernel_size=1): weight (3C, C, 1, 1, 1), bias (3C,)
    w_qkv = jax.random.normal(k1, (3 * C, C, 1, 1, 1), dtype=jnp.float32) * 0.1
    b_qkv = jax.random.normal(k2, (3 * C,), dtype=jnp.float32) * 0.1
    # Conv3d(dim, dim, kernel_size=1): weight (C, C, 1, 1, 1), bias (C,)
    w_out = jax.random.normal(k3, (C, C, 1, 1, 1), dtype=jnp.float32) * 0.1
    b_out = jax.random.normal(k4, (C,), dtype=jnp.float32) * 0.1

    out = attention_pallas(x, w_qkv, b_qkv, w_out, b_out,
                           heads=HEADS, scale=SCALE)
    out = jax.block_until_ready(out)

    ref = attention_ref(x, w_qkv, b_qkv, w_out, b_out, heads=HEADS, scale=SCALE)
    assert out.shape == (B, C, X, Y, Z)
    err = float(jnp.max(jnp.abs(out - ref)))
    # bf16 MXU operands (f32 accumulation) + approx reciprocal -> loose tol
    assert err < 5e-2, f"max abs err {err}"

    print("KERNEL_OK")
</pallas_src>

<mosaic_0001>
module attributes {stable_mosaic.version = 11 : i64} {
  func.func @_attention_kernel(%arg0: i32, %arg1: i32, %arg2: i32, %arg3: memref<1x8x128xbf16, #tpu.memory_space<vmem>>, %arg4: memref<3x4x2x8xbf16, #tpu.memory_space<vmem>>, %arg5: memref<3x4x2x1xf32, #tpu.memory_space<vmem>>, %arg6: memref<8x8xbf16, #tpu.memory_space<vmem>>, %arg7: memref<8x1xf32, #tpu.memory_space<vmem>>, %arg8: memref<1x8x128xf32, #tpu.memory_space<vmem>>, %arg9: memref<4x2x128xbf16, #tpu.memory_space<vmem>>, %arg10: memref<4x2x128xbf16, #tpu.memory_space<vmem>>, %arg11: memref<4x2x128xbf16, #tpu.memory_space<vmem>>, %arg12: memref<8x128xf32, #tpu.memory_space<vmem>>) attributes {dimension_semantics = [#tpu.dimension_semantics<parallel>, #tpu.dimension_semantics<parallel>, #tpu.dimension_semantics<arbitrary>], iteration_bounds = array<i64: 2, 1, 1>, scalar_prefetch = 0 : i64, scratch_operands = 4 : i64, tpu.core_type = #tpu.core_type<tc>, window_params = [{transform_indices = @transform_0, window_bounds = array<i64: 1, 8, 128>}, {pipeline_mode = #tpu.pipeline_mode<synchronous>, transform_indices = @transform_1, window_bounds = array<i64: 3, 4, 2, 8>}, {pipeline_mode = #tpu.pipeline_mode<synchronous>, transform_indices = @transform_2, window_bounds = array<i64: 3, 4, 2, 1>}, {pipeline_mode = #tpu.pipeline_mode<synchronous>, transform_indices = @transform_3, window_bounds = array<i64: 8, 8>}, {pipeline_mode = #tpu.pipeline_mode<synchronous>, transform_indices = @transform_4, window_bounds = array<i64: 8, 1>}, {transform_indices = @transform_5, window_bounds = array<i64: 1, 8, 128>}]} {
    %c0_i32 = arith.constant 0 : i32
    %0 = arith.cmpi eq, %arg2, %c0_i32 : i32
    %1 = arith.extui %0 : i1 to i32
    %c0_i32_0 = arith.constant 0 : i32
    %2 = arith.cmpi ne, %1, %c0_i32_0 : i32
    scf.if %2 {
      %c0_62 = arith.constant 0 : index
      %c0_63 = arith.constant 0 : index
      %c0_64 = arith.constant 0 : index
      %115 = vector.load %arg3[%c0_62, %c0_63, %c0_64] : memref<1x8x128xbf16, #tpu.memory_space<vmem>>, vector<1x8x128xbf16>
      %116 = vector.shape_cast %115 : vector<1x8x128xbf16> to vector<8x128xbf16>
      %117 = tpu.iota {dimensions = array<i32: 1>} : vector<2x128xi32>
      %c64_i32_65 = arith.constant 64 : i32
      %118 = vector.broadcast %c64_i32_65 : i32 to vector<2x128xi32>
      %119 = arith.cmpi slt, %117, %118 : vector<2x128xi32>
      %c0_66 = arith.constant 0 : index
      %c0_67 = arith.constant 0 : index
      %c0_68 = arith.constant 0 : index
      %c0_69 = arith.constant 0 : index
      %120 = vector.load %arg4[%c0_66, %c0_67, %c0_68, %c0_69] : memref<3x4x2x8xbf16, #tpu.memory_space<vmem>>, vector<1x1x2x8xbf16>
      %121 = vector.shape_cast %120 : vector<1x1x2x8xbf16> to vector<2x8xbf16>
      %cst_70 = arith.constant dense<0.000000e+00> : vector<2x128xf32>
      %122 = tpu.matmul %121, %116, %cst_70 {dimension_numbers = #tpu.dot_dimension_numbers<[1], [0], [0], [1], [0, 0, 1, 1], [], []>} : vector<2x8xbf16>, vector<8x128xbf16>, vector<2x128xf32> -> vector<2x128xf32>
      %c0_71 = arith.constant 0 : index
      %c0_72 = arith.constant 0 : index
      %c0_73 = arith.constant 0 : index
      %c0_74 = arith.constant 0 : index
      %123 = vector.load %arg5[%c0_71, %c0_72, %c0_73, %c0_74] : memref<3x4x2x1xf32, #tpu.memory_space<vmem>>, vector<1x1x2x1xf32>
      %124 = vector.shape_cast %123 : vector<1x1x2x1xf32> to vector<2x1xf32>
      %125 = vector.broadcast %124 : vector<2x1xf32> to vector<2x128xf32>
      %126 = arith.addf %122, %125 : vector<2x128xf32>
      %c1_75 = arith.constant 1 : index
      %c0_76 = arith.constant 0 : index
      %c0_77 = arith.constant 0 : index
      %c0_78 = arith.constant 0 : index
      %127 = vector.load %arg4[%c1_75, %c0_76, %c0_77, %c0_78] : memref<3x4x2x8xbf16, #tpu.memory_space<vmem>>, vector<1x1x2x8xbf16>
      %128 = vector.shape_cast %127 : vector<1x1x2x8xbf16> to vector<2x8xbf16>
      %cst_79 = arith.constant dense<0.000000e+00> : vector<2x128xf32>
      %129 = tpu.matmul %128, %116, %cst_79 {dimension_numbers = #tpu.dot_dimension_numbers<[1], [0], [0], [1], [0, 0, 1, 1], [], []>} : vector<2x8xbf16>, vector<8x128xbf16>, vector<2x128xf32> -> vector<2x128xf32>
      %c1_80 = arith.constant 1 : index
      %c0_81 = arith.constant 0 : index
      %c0_82 = arith.constant 0 : index
      %c0_83 = arith.constant 0 : index
      %130 = vector.load %arg5[%c1_80, %c0_81, %c0_82, %c0_83] : memref<3x4x2x1xf32, #tpu.memory_space<vmem>>, vector<1x1x2x1xf32>
      %131 = vector.shape_cast %130 : vector<1x1x2x1xf32> to vector<2x1xf32>
      %132 = vector.broadcast %131 : vector<2x1xf32> to vector<2x128xf32>
      %133 = arith.addf %129, %132 : vector<2x128xf32>
      %c2_84 = arith.constant 2 : index
      %c0_85 = arith.constant 0 : index
      %c0_86 = arith.constant 0 : index
      %c0_87 = arith.constant 0 : index
      %134 = vector.load %arg4[%c2_84, %c0_85, %c0_86, %c0_87] : memref<3x4x2x8xbf16, #tpu.memory_space<vmem>>, vector<1x1x2x8xbf16>
      %135 = vector.shape_cast %134 : vector<1x1x2x8xbf16> to vector<2x8xbf16>
      %cst_88 = arith.constant dense<0.000000e+00> : vector<2x128xf32>
      %136 = tpu.matmul %135, %116, %cst_88 {dimension_numbers = #tpu.dot_dimension_numbers<[1], [0], [0], [1], [0, 0, 1, 1], [], []>} : vector<2x8xbf16>, vector<8x128xbf16>, vector<2x128xf32> -> vector<2x128xf32>
      %c2_89 = arith.constant 2 : index
      %c0_90 = arith.constant 0 : index
      %c0_91 = arith.constant 0 : index
      %c0_92 = arith.constant 0 : index
      %137 = vector.load %arg5[%c2_89, %c0_90, %c0_91, %c0_92] : memref<3x4x2x1xf32, #tpu.memory_space<vmem>>, vector<1x1x2x1xf32>
      %138 = vector.shape_cast %137 : vector<1x1x2x1xf32> to vector<2x1xf32>
      %139 = vector.broadcast %138 : vector<2x1xf32> to vector<2x128xf32>
      %140 = arith.addf %136, %139 : vector<2x128xf32>
      %cst_93 = arith.constant 0.000000e+00 : f32
      %141 = vector.broadcast %cst_93 : f32 to vector<2x128xf32>
      %142 = arith.select %119, %126, %141 : vector<2x128xi1>, vector<2x128xf32>
      %cst_94 = arith.constant 0.000000e+00 : f32
      %143 = vector.broadcast %cst_94 : f32 to vector<2x128xf32>
      %144 = arith.select %119, %133, %143 : vector<2x128xi1>, vector<2x128xf32>
      %145 = arith.mulf %142, %142 : vector<2x128xf32>
      %cst_95 = arith.constant dense<0.000000e+00> : vector<2xf32>
      %146 = vector.multi_reduction <add>, %145, %cst_95 [1] : vector<2x128xf32> to vector<2xf32>
      %147 = vector.shape_cast %146 : vector<2xf32> to vector<2x1xf32>
      %cst_96 = arith.constant 1.000000e-24 : f32
      %148 = vector.broadcast %cst_96 : f32 to vector<2x1xf32>
      %149 = arith.maximumf %147, %148 : vector<2x1xf32>
      %150 = math.rsqrt %149 : vector<2x1xf32>
      %151 = arith.mulf %144, %144 : vector<2x128xf32>
      %cst_97 = arith.constant dense<0.000000e+00> : vector<2xf32>
      %152 = vector.multi_reduction <add>, %151, %cst_97 [1] : vector<2x128xf32> to vector<2xf32>
      %153 = vector.shape_cast %152 : vector<2xf32> to vector<2x1xf32>
      %cst_98 = arith.constant 1.000000e-24 : f32
      %154 = vector.broadcast %cst_98 : f32 to vector<2x1xf32>
      %155 = arith.maximumf %153, %154 : vector<2x1xf32>
      %156 = math.rsqrt %155 : vector<2x1xf32>
      %cst_99 = arith.constant 1.000000e+01 : f32
      %157 = vector.broadcast %cst_99 : f32 to vector<2x1xf32>
      %158 = arith.mulf %150, %157 : vector<2x1xf32>
      %159 = vector.broadcast %158 : vector<2x1xf32> to vector<2x128xf32>
      %160 = arith.mulf %142, %159 : vector<2x128xf32>
      %161 = arith.truncf %160 : vector<2x128xf32> to vector<2x128xbf16>
      %c0_100 = arith.constant 0 : index
      %c0_101 = arith.constant 0 : index
      %c0_102 = arith.constant 0 : index
      %162 = vector.load %arg9[%c0_100, %c0_101, %c0_102] : memref<4x2x128xbf16, #tpu.memory_space<vmem>>, vector<1x2x128xbf16>
      %163 = vector.shape_cast %162 : vector<1x2x128xbf16> to vector<2x128xbf16>
      %164 = vector.shape_cast %161 : vector<2x128xbf16> to vector<1x2x128xbf16>
      tpu.vector_store %arg9[%c0_100, %c0_101, %c0_102], %164 {strides = array<i32>} : memref<4x2x128xbf16, #tpu.memory_space<vmem>>, vector<1x2x128xbf16>,
      %165 = vector.broadcast %156 : vector<2x1xf32> to vector<2x128xf32>
      %166 = arith.mulf %144, %165 : vector<2x128xf32>
      %167 = arith.truncf %166 : vector<2x128xf32> to vector<2x128xbf16>
      %c0_103 = arith.constant 0 : index
      %c0_104 = arith.constant 0 : index
      %c0_105 = arith.constant 0 : index
      %168 = vector.load %arg10[%c0_103, %c0_104, %c0_105] : memref<4x2x128xbf16, #tpu.memory_space<vmem>>, vector<1x2x128xbf16>
      %169 = vector.shape_cast %168 : vector<1x2x128xbf16> to vector<2x128xbf16>
      %170 = vector.shape_cast %167 : vector<2x128xbf16> to vector<1x2x128xbf16>
      tpu.vector_store %arg10[%c0_103, %c0_104, %c0_105], %170 {strides = array<i32>} : memref<4x2x128xbf16, #tpu.memory_space<vmem>>, vector<1x2x128xbf16>,
      %171 = arith.truncf %140 : vector<2x128xf32> to vector<2x128xbf16>
      %c0_106 = arith.constant 0 : index
      %c0_107 = arith.constant 0 : index
      %c0_108 = arith.constant 0 : index
      %172 = vector.load %arg11[%c0_106, %c0_107, %c0_108] : memref<4x2x128xbf16, #tpu.memory_space<vmem>>, vector<1x2x128xbf16>
      %173 = vector.shape_cast %172 : vector<1x2x128xbf16> to vector<2x128xbf16>
      %174 = vector.shape_cast %171 : vector<2x128xbf16> to vector<1x2x128xbf16>
      tpu.vector_store %arg11[%c0_106, %c0_107, %c0_108], %174 {strides = array<i32>} : memref<4x2x128xbf16, #tpu.memory_space<vmem>>, vector<1x2x128xbf16>,
      %c0_109 = arith.constant 0 : index
      %c1_110 = arith.constant 1 : index
      %c0_111 = arith.constant 0 : index
      %c0_112 = arith.constant 0 : index
      %175 = vector.load %arg4[%c0_109, %c1_110, %c0_111, %c0_112] : memref<3x4x2x8xbf16, #tpu.memory_space<vmem>>, vector<1x1x2x8xbf16>
      %176 = vector.shape_cast %175 : vector<1x1x2x8xbf16> to vector<2x8xbf16>
      %cst_113 = arith.constant dense<0.000000e+00> : vector<2x128xf32>
      %177 = tpu.matmul %176, %116, %cst_113 {dimension_numbers = #tpu.dot_dimension_numbers<[1], [0], [0], [1], [0, 0, 1, 1], [], []>} : vector<2x8xbf16>, vector<8x128xbf16>, vector<2x128xf32> -> vector<2x128xf32>
      %c0_114 = arith.constant 0 : index
      %c1_115 = arith.constant 1 : index
      %c0_116 = arith.constant 0 : index
      %c0_117 = arith.constant 0 : index
      %178 = vector.load %arg5[%c0_114, %c1_115, %c0_116, %c0_117] : memref<3x4x2x1xf32, #tpu.memory_space<vmem>>, vector<1x1x2x1xf32>
      %179 = vector.shape_cast %178 : vector<1x1x2x1xf32> to vector<2x1xf32>
      %180 = vector.broadcast %179 : vector<2x1xf32> to vector<2x128xf32>
      %181 = arith.addf %177, %180 : vector<2x128xf32>
      %c1_118 = arith.constant 1 : index
      %c1_119 = arith.constant 1 : index
      %c0_120 = arith.constant 0 : index
      %c0_121 = arith.constant 0 : index
      %182 = vector.load %arg4[%c1_118, %c1_119, %c0_120, %c0_121] : memref<3x4x2x8xbf16, #tpu.memory_space<vmem>>, vector<1x1x2x8xbf16>
      %183 = vector.shape_cast %182 : vector<1x1x2x8xbf16> to vector<2x8xbf16>
      %cst_122 = arith.constant dense<0.000000e+00> : vector<2x128xf32>
      %184 = tpu.matmul %183, %116, %cst_122 {dimension_numbers = #tpu.dot_dimension_numbers<[1], [0], [0], [1], [0, 0, 1, 1], [], []>} : vector<2x8xbf16>, vector<8x128xbf16>, vector<2x128xf32> -> vector<2x128xf32>
      %c1_123 = arith.constant 1 : index
      %c1_124 = arith.constant 1 : index
      %c0_125 = arith.constant 0 : index
      %c0_126 = arith.constant 0 : index
      %185 = vector.load %arg5[%c1_123, %c1_124, %c0_125, %c0_126] : memref<3x4x2x1xf32, #tpu.memory_space<vmem>>, vector<1x1x2x1xf32>
      %186 = vector.shape_cast %185 : vector<1x1x2x1xf32> to vector<2x1xf32>
      %187 = vector.broadcast %186 : vector<2x1xf32> to vector<2x128xf32>
      %188 = arith.addf %184, %187 : vector<2x128xf32>
      %c2_127 = arith.constant 2 : index
      %c1_128 = arith.constant 1 : index
      %c0_129 = arith.constant 0 : index
      %c0_130 = arith.constant 0 : index
      %189 = vector.load %arg4[%c2_127, %c1_128, %c0_129, %c0_130] : memref<3x4x2x8xbf16, #tpu.memory_space<vmem>>, vector<1x1x2x8xbf16>
      %190 = vector.shape_cast %189 : vector<1x1x2x8xbf16> to vector<2x8xbf16>
      %cst_131 = arith.constant dense<0.000000e+00> : vector<2x128xf32>
      %191 = tpu.matmul %190, %116, %cst_131 {dimension_numbers = #tpu.dot_dimension_numbers<[1], [0], [0], [1], [0, 0, 1, 1], [], []>} : vector<2x8xbf16>, vector<8x128xbf16>, vector<2x128xf32> -> vector<2x128xf32>
      %c2_132 = arith.constant 2 : index
      %c1_133 = arith.constant 1 : index
      %c0_134 = arith.constant 0 : index
      %c0_135 = arith.constant 0 : index
      %192 = vector.load %arg5[%c2_132, %c1_133, %c0_134, %c0_135] : memref<3x4x2x1xf32, #tpu.memory_space<vmem>>, vector<1x1x2x1xf32>
      %193 = vector.shape_cast %192 : vector<1x1x2x1xf32> to vector<2x1xf32>
      %194 = vector.broadcast %193 : vector<2x1xf32> to vector<2x128xf32>
      %195 = arith.addf %191, %194 : vector<2x128xf32>
      %cst_136 = arith.constant 0.000000e+00 : f32
      %196 = vector.broadcast %cst_136 : f32 to vector<2x128xf32>
      %197 = arith.select %119, %181, %196 : vector<2x128xi1>, vector<2x128xf32>
      %cst_137 = arith.constant 0.000000e+00 : f32
      %198 = vector.broadcast %cst_137 : f32 to vector<2x128xf32>
      %199 = arith.select %119, %188, %198 : vector<2x128xi1>, vector<2x128xf32>
      %200 = arith.mulf %197, %197 : vector<2x128xf32>
      %cst_138 = arith.constant dense<0.000000e+00> : vector<2xf32>
      %201 = vector.multi_reduction <add>, %200, %cst_138 [1] : vector<2x128xf32> to vector<2xf32>
      %202 = vector.shape_cast %201 : vector<2xf32> to vector<2x1xf32>
      %cst_139 = arith.constant 1.000000e-24 : f32
      %203 = vector.broadcast %cst_139 : f32 to vector<2x1xf32>
      %204 = arith.maximumf %202, %203 : vector<2x1xf32>
      %205 = math.rsqrt %204 : vector<2x1xf32>
      %206 = arith.mulf %199, %199 : vector<2x128xf32>
      %cst_140 = arith.constant dense<0.000000e+00> : vector<2xf32>
      %207 = vector.multi_reduction <add>, %206, %cst_140 [1] : vector<2x128xf32> to vector<2xf32>
      %208 = vector.shape_cast %207 : vector<2xf32> to vector<2x1xf32>
      %cst_141 = arith.constant 1.000000e-24 : f32
      %209 = vector.broadcast %cst_141 : f32 to vector<2x1xf32>
      %210 = arith.maximumf %208, %209 : vector<2x1xf32>
      %211 = math.rsqrt %210 : vector<2x1xf32>
      %cst_142 = arith.constant 1.000000e+01 : f32
      %212 = vector.broadcast %cst_142 : f32 to vector<2x1xf32>
      %213 = arith.mulf %205, %212 : vector<2x1xf32>
      %214 = vector.broadcast %213 : vector<2x1xf32> to vector<2x128xf32>
      %215 = arith.mulf %197, %214 : vector<2x128xf32>
      %216 = arith.truncf %215 : vector<2x128xf32> to vector<2x128xbf16>
      %c1_143 = arith.constant 1 : index
      %c0_144 = arith.constant 0 : index
      %c0_145 = arith.constant 0 : index
      %217 = vector.load %arg9[%c1_143, %c0_144, %c0_145] : memref<4x2x128xbf16, #tpu.memory_space<vmem>>, vector<1x2x128xbf16>
      %218 = vector.shape_cast %217 : vector<1x2x128xbf16> to vector<2x128xbf16>
      %219 = vector.shape_cast %216 : vector<2x128xbf16> to vector<1x2x128xbf16>
      tpu.vector_store %arg9[%c1_143, %c0_144, %c0_145], %219 {strides = array<i32>} : memref<4x2x128xbf16, #tpu.memory_space<vmem>>, vector<1x2x128xbf16>,
      %220 = vector.broadcast %211 : vector<2x1xf32> to vector<2x128xf32>
      %221 = arith.mulf %199, %220 : vector<2x128xf32>
      %222 = arith.truncf %221 : vector<2x128xf32> to vector<2x128xbf16>
      %c1_146 = arith.constant 1 : index
      %c0_147 = arith.constant 0 : index
      %c0_148 = arith.constant 0 : index
      %223 = vector.load %arg10[%c1_146, %c0_147, %c0_148] : memref<4x2x128xbf16, #tpu.memory_space<vmem>>, vector<1x2x128xbf16>
      %224 = vector.shape_cast %223 : vector<1x2x128xbf16> to vector<2x128xbf16>
      %225 = vector.shape_cast %222 : vector<2x128xbf16> to vector<1x2x128xbf16>
      tpu.vector_store %arg10[%c1_146, %c0_147, %c0_148], %225 {strides = array<i32>} : memref<4x2x128xbf16, #tpu.memory_space<vmem>>, vector<1x2x128xbf16>,
      %226 = arith.truncf %195 : vector<2x128xf32> to vector<2x128xbf16>
      %c1_149 = arith.constant 1 : index
      %c0_150 = arith.constant 0 : index
      %c0_151 = arith.constant 0 : index
      %227 = vector.load %arg11[%c1_149, %c0_150, %c0_151] : memref<4x2x128xbf16, #tpu.memory_space<vmem>>, vector<1x2x128xbf16>
      %228 = vector.shape_cast %227 : vector<1x2x128xbf16> to vector<2x128xbf16>
      %229 = vector.shape_cast %226 : vector<2x128xbf16> to vector<1x2x128xbf16>
      tpu.vector_store %arg11[%c1_149, %c0_150, %c0_151], %229 {strides = array<i32>} : memref<4x2x128xbf16, #tpu.memory_space<vmem>>, vector<1x2x128xbf16>,
      %c0_152 = arith.constant 0 : index
      %c2_153 = arith.constant 2 : index
      %c0_154 = arith.constant 0 : index
      %c0_155 = arith.constant 0 : index
      %230 = vector.load %arg4[%c0_152, %c2_153, %c0_154, %c0_155] : memref<3x4x2x8xbf16, #tpu.memory_space<vmem>>, vector<1x1x2x8xbf16>
      %231 = vector.shape_cast %230 : vector<1x1x2x8xbf16> to vector<2x8xbf16>
      %cst_156 = arith.constant dense<0.000000e+00> : vector<2x128xf32>
      %232 = tpu.matmul %231, %116, %cst_156 {dimension_numbers = #tpu.dot_dimension_numbers<[1], [0], [0], [1], [0, 0, 1, 1], [], []>} : vector<2x8xbf16>, vector<8x128xbf16>, vector<2x128xf32> -> vector<2x128xf32>
      %c0_157 = arith.constant 0 : index
      %c2_158 = arith.constant 2 : index
      %c0_159 = arith.constant 0 : index
      %c0_160 = arith.constant 0 : index
      %233 = vector.load %arg5[%c0_157, %c2_158, %c0_159, %c0_160] : memref<3x4x2x1xf32, #tpu.memory_space<vmem>>, vector<1x1x2x1xf32>
      %234 = vector.shape_cast %233 : vector<1x1x2x1xf32> to vector<2x1xf32>
      %235 = vector.broadcast %234 : vector<2x1xf32> to vector<2x128xf32>
      %236 = arith.addf %232, %235 : vector<2x128xf32>
      %c1_161 = arith.constant 1 : index
      %c2_162 = arith.constant 2 : index
      %c0_163 = arith.constant 0 : index
      %c0_164 = arith.constant 0 : index
      %237 = vector.load %arg4[%c1_161, %c2_162, %c0_163, %c0_164] : memref<3x4x2x8xbf16, #tpu.memory_space<vmem>>, vector<1x1x2x8xbf16>
      %238 = vector.shape_cast %237 : vector<1x1x2x8xbf16> to vector<2x8xbf16>
      %cst_165 = arith.constant dense<0.000000e+00> : vector<2x128xf32>
      %239 = tpu.matmul %238, %116, %cst_165 {dimension_numbers = #tpu.dot_dimension_numbers<[1], [0], [0], [1], [0, 0, 1, 1], [], []>} : vector<2x8xbf16>, vector<8x128xbf16>, vector<2x128xf32> -> vector<2x128xf32>
      %c1_166 = arith.constant 1 : index
      %c2_167 = arith.constant 2 : index
      %c0_168 = arith.constant 0 : index
      %c0_169 = arith.constant 0 : index
      %240 = vector.load %arg5[%c1_166, %c2_167, %c0_168, %c0_169] : memref<3x4x2x1xf32, #tpu.memory_space<vmem>>, vector<1x1x2x1xf32>
      %241 = vector.shape_cast %240 : vector<1x1x2x1xf32> to vector<2x1xf32>
      %242 = vector.broadcast %241 : vector<2x1xf32> to vector<2x128xf32>
      %243 = arith.addf %239, %242 : vector<2x128xf32>
      %c2_170 = arith.constant 2 : index
      %c2_171 = arith.constant 2 : index
      %c0_172 = arith.constant 0 : index
      %c0_173 = arith.constant 0 : index
      %244 = vector.load %arg4[%c2_170, %c2_171, %c0_172, %c0_173] : memref<3x4x2x8xbf16, #tpu.memory_space<vmem>>, vector<1x1x2x8xbf16>
      %245 = vector.shape_cast %244 : vector<1x1x2x8xbf16> to vector<2x8xbf16>
      %cst_174 = arith.constant dense<0.000000e+00> : vector<2x128xf32>
      %246 = tpu.matmul %245, %116, %cst_174 {dimension_numbers = #tpu.dot_dimension_numbers<[1], [0], [0], [1], [0, 0, 1, 1], [], []>} : vector<2x8xbf16>, vector<8x128xbf16>, vector<2x128xf32> -> vector<2x128xf32>
      %c2_175 = arith.constant 2 : index
      %c2_176 = arith.constant 2 : index
      %c0_177 = arith.constant 0 : index
      %c0_178 = arith.constant 0 : index
      %247 = vector.load %arg5[%c2_175, %c2_176, %c0_177, %c0_178] : memref<3x4x2x1xf32, #tpu.memory_space<vmem>>, vector<1x1x2x1xf32>
      %248 = vector.shape_cast %247 : vector<1x1x2x1xf32> to vector<2x1xf32>
      %249 = vector.broadcast %248 : vector<2x1xf32> to vector<2x128xf32>
      %250 = arith.addf %246, %249 : vector<2x128xf32>
      %cst_179 = arith.constant 0.000000e+00 : f32
      %251 = vector.broadcast %cst_179 : f32 to vector<2x128xf32>
      %252 = arith.select %119, %236, %251 : vector<2x128xi1>, vector<2x128xf32>
      %cst_180 = arith.constant 0.000000e+00 : f32
      %253 = vector.broadcast %cst_180 : f32 to vector<2x128xf32>
      %254 = arith.select %119, %243, %253 : vector<2x128xi1>, vector<2x128xf32>
      %255 = arith.mulf %252, %252 : vector<2x128xf32>
      %cst_181 = arith.constant dense<0.000000e+00> : vector<2xf32>
      %256 = vector.multi_reduction <add>, %255, %cst_181 [1] : vector<2x128xf32> to vector<2xf32>
      %257 = vector.shape_cast %256 : vector<2xf32> to vector<2x1xf32>
      %cst_182 = arith.constant 1.000000e-24 : f32
      %258 = vector.broadcast %cst_182 : f32 to vector<2x1xf32>
      %259 = arith.maximumf %257, %258 : vector<2x1xf32>
      %260 = math.rsqrt %259 : vector<2x1xf32>
      %261 = arith.mulf %254, %254 : vector<2x128xf32>
      %cst_183 = arith.constant dense<0.000000e+00> : vector<2xf32>
      %262 = vector.multi_reduction <add>, %261, %cst_183 [1] : vector<2x128xf32> to vector<2xf32>
      %263 = vector.shape_cast %262 : vector<2xf32> to vector<2x1xf32>
      %cst_184 = arith.constant 1.000000e-24 : f32
      %264 = vector.broadcast %cst_184 : f32 to vector<2x1xf32>
      %265 = arith.maximumf %263, %264 : vector<2x1xf32>
      %266 = math.rsqrt %265 : vector<2x1xf32>
      %cst_185 = arith.constant 1.000000e+01 : f32
      %267 = vector.broadcast %cst_185 : f32 to vector<2x1xf32>
      %268 = arith.mulf %260, %267 : vector<2x1xf32>
      %269 = vector.broadcast %268 : vector<2x1xf32> to vector<2x128xf32>
      %270 = arith.mulf %252, %269 : vector<2x128xf32>
      %271 = arith.truncf %270 : vector<2x128xf32> to vector<2x128xbf16>
      %c2_186 = arith.constant 2 : index
      %c0_187 = arith.constant 0 : index
      %c0_188 = arith.constant 0 : index
      %272 = vector.load %arg9[%c2_186, %c0_187, %c0_188] : memref<4x2x128xbf16, #tpu.memory_space<vmem>>, vector<1x2x128xbf16>
      %273 = vector.shape_cast %272 : vector<1x2x128xbf16> to vector<2x128xbf16>
      %274 = vector.shape_cast %271 : vector<2x128xbf16> to vector<1x2x128xbf16>
      tpu.vector_store %arg9[%c2_186, %c0_187, %c0_188], %274 {strides = array<i32>} : memref<4x2x128xbf16, #tpu.memory_space<vmem>>, vector<1x2x128xbf16>,
      %275 = vector.broadcast %266 : vector<2x1xf32> to vector<2x128xf32>
      %276 = arith.mulf %254, %275 : vector<2x128xf32>
      %277 = arith.truncf %276 : vector<2x128xf32> to vector<2x128xbf16>
      %c2_189 = arith.constant 2 : index
      %c0_190 = arith.constant 0 : index
      %c0_191 = arith.constant 0 : index
      %278 = vector.load %arg10[%c2_189, %c0_190, %c0_191] : memref<4x2x128xbf16, #tpu.memory_space<vmem>>, vector<1x2x128xbf16>
      %279 = vector.shape_cast %278 : vector<1x2x128xbf16> to vector<2x128xbf16>
      %280 = vector.shape_cast %277 : vector<2x128xbf16> to vector<1x2x128xbf16>
      tpu.vector_store %arg10[%c2_189, %c0_190, %c0_191], %280 {strides = array<i32>} : memref<4x2x128xbf16, #tpu.memory_space<vmem>>, vector<1x2x128xbf16>,
      %281 = arith.truncf %250 : vector<2x128xf32> to vector<2x128xbf16>
      %c2_192 = arith.constant 2 : index
      %c0_193 = arith.constant 0 : index
      %c0_194 = arith.constant 0 : index
      %282 = vector.load %arg11[%c2_192, %c0_193, %c0_194] : memref<4x2x128xbf16, #tpu.memory_space<vmem>>, vector<1x2x128xbf16>
      %283 = vector.shape_cast %282 : vector<1x2x128xbf16> to vector<2x128xbf16>
      %284 = vector.shape_cast %281 : vector<2x128xbf16> to vector<1x2x128xbf16>
      tpu.vector_store %arg11[%c2_192, %c0_193, %c0_194], %284 {strides = array<i32>} : memref<4x2x128xbf16, #tpu.memory_space<vmem>>, vector<1x2x128xbf16>,
      %c0_195 = arith.constant 0 : index
      %c3_196 = arith.constant 3 : index
      %c0_197 = arith.constant 0 : index
      %c0_198 = arith.constant 0 : index
      %285 = vector.load %arg4[%c0_195, %c3_196, %c0_197, %c0_198] : memref<3x4x2x8xbf16, #tpu.memory_space<vmem>>, vector<1x1x2x8xbf16>
      %286 = vector.shape_cast %285 : vector<1x1x2x8xbf16> to vector<2x8xbf16>
      %cst_199 = arith.constant dense<0.000000e+00> : vector<2x128xf32>
      %287 = tpu.matmul %286, %116, %cst_199 {dimension_numbers = #tpu.dot_dimension_numbers<[1], [0], [0], [1], [0, 0, 1, 1], [], []>} : vector<2x8xbf16>, vector<8x128xbf16>, vector<2x128xf32> -> vector<2x128xf32>
      %c0_200 = arith.constant 0 : index
      %c3_201 = arith.constant 3 : index
      %c0_202 = arith.constant 0 : index
      %c0_203 = arith.constant 0 : index
      %288 = vector.load %arg5[%c0_200, %c3_201, %c0_202, %c0_203] : memref<3x4x2x1xf32, #tpu.memory_space<vmem>>, vector<1x1x2x1xf32>
      %289 = vector.shape_cast %288 : vector<1x1x2x1xf32> to vector<2x1xf32>
      %290 = vector.broadcast %289 : vector<2x1xf32> to vector<2x128xf32>
      %291 = arith.addf %287, %290 : vector<2x128xf32>
      %c1_204 = arith.constant 1 : index
      %c3_205 = arith.constant 3 : index
      %c0_206 = arith.constant 0 : index
      %c0_207 = arith.constant 0 : index
      %292 = vector.load %arg4[%c1_204, %c3_205, %c0_206, %c0_207] : memref<3x4x2x8xbf16, #tpu.memory_space<vmem>>, vector<1x1x2x8xbf16>
      %293 = vector.shape_cast %292 : vector<1x1x2x8xbf16> to vector<2x8xbf16>
      %cst_208 = arith.constant dense<0.000000e+00> : vector<2x128xf32>
      %294 = tpu.matmul %293, %116, %cst_208 {dimension_numbers = #tpu.dot_dimension_numbers<[1], [0], [0], [1], [0, 0, 1, 1], [], []>} : vector<2x8xbf16>, vector<8x128xbf16>, vector<2x128xf32> -> vector<2x128xf32>
      %c1_209 = arith.constant 1 : index
      %c3_210 = arith.constant 3 : index
      %c0_211 = arith.constant 0 : index
      %c0_212 = arith.constant 0 : index
      %295 = vector.load %arg5[%c1_209, %c3_210, %c0_211, %c0_212] : memref<3x4x2x1xf32, #tpu.memory_space<vmem>>, vector<1x1x2x1xf32>
      %296 = vector.shape_cast %295 : vector<1x1x2x1xf32> to vector<2x1xf32>
      %297 = vector.broadcast %296 : vector<2x1xf32> to vector<2x128xf32>
      %298 = arith.addf %294, %297 : vector<2x128xf32>
      %c2_213 = arith.constant 2 : index
      %c3_214 = arith.constant 3 : index
      %c0_215 = arith.constant 0 : index
      %c0_216 = arith.constant 0 : index
      %299 = vector.load %arg4[%c2_213, %c3_214, %c0_215, %c0_216] : memref<3x4x2x8xbf16, #tpu.memory_space<vmem>>, vector<1x1x2x8xbf16>
      %300 = vector.shape_cast %299 : vector<1x1x2x8xbf16> to vector<2x8xbf16>
      %cst_217 = arith.constant dense<0.000000e+00> : vector<2x128xf32>
      %301 = tpu.matmul %300, %116, %cst_217 {dimension_numbers = #tpu.dot_dimension_numbers<[1], [0], [0], [1], [0, 0, 1, 1], [], []>} : vector<2x8xbf16>, vector<8x128xbf16>, vector<2x128xf32> -> vector<2x128xf32>
      %c2_218 = arith.constant 2 : index
      %c3_219 = arith.constant 3 : index
      %c0_220 = arith.constant 0 : index
      %c0_221 = arith.constant 0 : index
      %302 = vector.load %arg5[%c2_218, %c3_219, %c0_220, %c0_221] : memref<3x4x2x1xf32, #tpu.memory_space<vmem>>, vector<1x1x2x1xf32>
      %303 = vector.shape_cast %302 : vector<1x1x2x1xf32> to vector<2x1xf32>
      %304 = vector.broadcast %303 : vector<2x1xf32> to vector<2x128xf32>
      %305 = arith.addf %301, %304 : vector<2x128xf32>
      %cst_222 = arith.constant 0.000000e+00 : f32
      %306 = vector.broadcast %cst_222 : f32 to vector<2x128xf32>
      %307 = arith.select %119, %291, %306 : vector<2x128xi1>, vector<2x128xf32>
      %cst_223 = arith.constant 0.000000e+00 : f32
      %308 = vector.broadcast %cst_223 : f32 to vector<2x128xf32>
      %309 = arith.select %119, %298, %308 : vector<2x128xi1>, vector<2x128xf32>
      %310 = arith.mulf %307, %307 : vector<2x128xf32>
      %cst_224 = arith.constant dense<0.000000e+00> : vector<2xf32>
      %311 = vector.multi_reduction <add>, %310, %cst_224 [1] : vector<2x128xf32> to vector<2xf32>
      %312 = vector.shape_cast %311 : vector<2xf32> to vector<2x1xf32>
      %cst_225 = arith.constant 1.000000e-24 : f32
      %313 = vector.broadcast %cst_225 : f32 to vector<2x1xf32>
      %314 = arith.maximumf %312, %313 : vector<2x1xf32>
      %315 = math.rsqrt %314 : vector<2x1xf32>
      %316 = arith.mulf %309, %309 : vector<2x128xf32>
      %cst_226 = arith.constant dense<0.000000e+00> : vector<2xf32>
      %317 = vector.multi_reduction <add>, %316, %cst_226 [1] : vector<2x128xf32> to vector<2xf32>
      %318 = vector.shape_cast %317 : vector<2xf32> to vector<2x1xf32>
      %cst_227 = arith.constant 1.000000e-24 : f32
      %319 = vector.broadcast %cst_227 : f32 to vector<2x1xf32>
      %320 = arith.maximumf %318, %319 : vector<2x1xf32>
      %321 = math.rsqrt %320 : vector<2x1xf32>
      %cst_228 = arith.constant 1.000000e+01 : f32
      %322 = vector.broadcast %cst_228 : f32 to vector<2x1xf32>
      %323 = arith.mulf %315, %322 : vector<2x1xf32>
      %324 = vector.broadcast %323 : vector<2x1xf32> to vector<2x128xf32>
      %325 = arith.mulf %307, %324 : vector<2x128xf32>
      %326 = arith.truncf %325 : vector<2x128xf32> to vector<2x128xbf16>
      %c3_229 = arith.constant 3 : index
      %c0_230 = arith.constant 0 : index
      %c0_231 = arith.constant 0 : index
      %327 = vector.load %arg9[%c3_229, %c0_230, %c0_231] : memref<4x2x128xbf16, #tpu.memory_space<vmem>>, vector<1x2x128xbf16>
      %328 = vector.shape_cast %327 : vector<1x2x128xbf16> to vector<2x128xbf16>
      %329 = vector.shape_cast %326 : vector<2x128xbf16> to vector<1x2x128xbf16>
      tpu.vector_store %arg9[%c3_229, %c0_230, %c0_231], %329 {strides = array<i32>} : memref<4x2x128xbf16, #tpu.memory_space<vmem>>, vector<1x2x128xbf16>,
      %330 = vector.broadcast %321 : vector<2x1xf32> to vector<2x128xf32>
      %331 = arith.mulf %309, %330 : vector<2x128xf32>
      %332 = arith.truncf %331 : vector<2x128xf32> to vector<2x128xbf16>
      %c3_232 = arith.constant 3 : index
      %c0_233 = arith.constant 0 : index
      %c0_234 = arith.constant 0 : index
      %333 = vector.load %arg10[%c3_232, %c0_233, %c0_234] : memref<4x2x128xbf16, #tpu.memory_space<vmem>>, vector<1x2x128xbf16>
      %334 = vector.shape_cast %333 : vector<1x2x128xbf16> to vector<2x128xbf16>
      %335 = vector.shape_cast %332 : vector<2x128xbf16> to vector<1x2x128xbf16>
      tpu.vector_store %arg10[%c3_232, %c0_233, %c0_234], %335 {strides = array<i32>} : memref<4x2x128xbf16, #tpu.memory_space<vmem>>, vector<1x2x128xbf16>,
      %336 = arith.truncf %305 : vector<2x128xf32> to vector<2x128xbf16>
      %c3_235 = arith.constant 3 : index
      %c0_236 = arith.constant 0 : index
      %c0_237 = arith.constant 0 : index
      %337 = vector.load %arg11[%c3_235, %c0_236, %c0_237] : memref<4x2x128xbf16, #tpu.memory_space<vmem>>, vector<1x2x128xbf16>
      %338 = vector.shape_cast %337 : vector<1x2x128xbf16> to vector<2x128xbf16>
      %339 = vector.shape_cast %336 : vector<2x128xbf16> to vector<1x2x128xbf16>
      tpu.vector_store %arg11[%c3_235, %c0_236, %c0_237], %339 {strides = array<i32>} : memref<4x2x128xbf16, #tpu.memory_space<vmem>>, vector<1x2x128xbf16>,
    } else {
    }
    %c1_i32 = arith.constant 1 : i32
    %3 = arith.muli %arg1, %c1_i32 : i32
    %4 = arith.addi %3, %arg2 : i32
    %c128_i32 = arith.constant 128 : i32
    %5 = arith.muli %4, %c128_i32 : i32
    %6 = tpu.assume_multiple %5, 128 : i32
    %7 = tpu.iota {dimensions = array<i32: 1>} : vector<1x128xi32>
    %c64_i32 = arith.constant 64 : i32
    %8 = vector.broadcast %c64_i32 : i32 to vector<1x128xi32>
    %9 = arith.cmpi slt, %7, %8 : vector<1x128xi32>
    %cst = arith.constant 0.000000e+00 : f32
    %cst_1 = arith.constant -1.000000e+30 : f32
    %10 = vector.broadcast %cst : f32 to vector<1x128xf32>
    %11 = vector.broadcast %cst_1 : f32 to vector<1x128xf32>
    %12 = arith.select %9, %10, %11 : vector<1x128xi1>, vector<1x128xf32>
    %c0 = arith.constant 0 : index
    %c0_2 = arith.constant 0 : index
    %13 = arith.index_cast %6 : i32 to index
    %14 = vector.load %arg9[%c0, %c0_2, %13] : memref<4x2x128xbf16, #tpu.memory_space<vmem>>, vector<1x2x128xbf16>
    %15 = vector.shape_cast %14 : vector<1x2x128xbf16> to vector<2x128xbf16>
    %c0_3 = arith.constant 0 : index
    %c0_4 = arith.constant 0 : index
    %c0_5 = arith.constant 0 : index
    %16 = vector.load %arg10[%c0_3, %c0_4, %c0_5] : memref<4x2x128xbf16, #tpu.memory_space<vmem>>, vector<1x2x128xbf16>
    %17 = vector.shape_cast %16 : vector<1x2x128xbf16> to vector<2x128xbf16>
    %cst_6 = arith.constant dense<0.000000e+00> : vector<128x128xf32>
    %18 = tpu.matmul %15, %17, %cst_6 {dimension_numbers = #tpu.dot_dimension_numbers<[0], [0], [1], [1], [0, 1, 1, 1], [], []>} : vector<2x128xbf16>, vector<2x128xbf16>, vector<128x128xf32> -> vector<128x128xf32>
    %19 = vector.broadcast %12 : vector<1x128xf32> to vector<128x128xf32>
    %20 = arith.addf %18, %19 : vector<128x128xf32>
    %cst_7 = arith.constant dense<0xFF800000> : vector<128xf32>
    %21 = vector.multi_reduction <maximumf>, %20, %cst_7 [1] : vector<128x128xf32> to vector<128xf32>
    %22 = vector.shape_cast %21 : vector<128xf32> to vector<128x1xf32>
    %23 = vector.broadcast %22 : vector<128x1xf32> to vector<128x128xf32>
    %24 = arith.subf %20, %23 : vector<128x128xf32>
    %25 = math.exp %24 : vector<128x128xf32>
    %cst_8 = arith.constant dense<0.000000e+00> : vector<128xf32>
    %26 = vector.multi_reduction <add>, %25, %cst_8 [1] : vector<128x128xf32> to vector<128xf32>
    %27 = vector.shape_cast %26 : vector<128xf32> to vector<128x1xf32>
    %28 = tpu.reciprocal %27 {approx = true} : vector<128x1xf32> -> vector<128x1xf32>
    %29 = vector.broadcast %28 : vector<128x1xf32> to vector<128x128xf32>
    %30 = arith.mulf %25, %29 : vector<128x128xf32>
    %31 = arith.truncf %30 : vector<128x128xf32> to vector<128x128xbf16>
    %c0_9 = arith.constant 0 : index
    %c0_10 = arith.constant 0 : index
    %c0_11 = arith.constant 0 : index
    %32 = vector.load %arg11[%c0_9, %c0_10, %c0_11] : memref<4x2x128xbf16, #tpu.memory_space<vmem>>, vector<1x2x128xbf16>
    %33 = vector.shape_cast %32 : vector<1x2x128xbf16> to vector<2x128xbf16>
    %cst_12 = arith.constant dense<0.000000e+00> : vector<2x128xf32>
    %34 = tpu.matmul %33, %31, %cst_12 {dimension_numbers = #tpu.dot_dimension_numbers<[1], [1], [0], [0], [0, 0, 1, 0], [], []>} : vector<2x128xbf16>, vector<128x128xbf16>, vector<2x128xf32> -> vector<2x128xf32>
    %c0_13 = arith.constant 0 : index
    %c0_14 = arith.constant 0 : index
    %35 = vector.load %arg12[%c0_13, %c0_14] : memref<8x128xf32, #tpu.memory_space<vmem>>, vector<2x128xf32>
    tpu.vector_store %arg12[%c0_13, %c0_14], %34 {strides = array<i32>} : memref<8x128xf32, #tpu.memory_space<vmem>>, vector<2x128xf32>,
    %c1 = arith.constant 1 : index
    %c0_15 = arith.constant 0 : index
    %36 = arith.index_cast %6 : i32 to index
    %37 = vector.load %arg9[%c1, %c0_15, %36] : memref<4x2x128xbf16, #tpu.memory_space<vmem>>, vector<1x2x128xbf16>
    %38 = vector.shape_cast %37 : vector<1x2x128xbf16> to vector<2x128xbf16>
    %c1_16 = arith.constant 1 : index
    %c0_17 = arith.constant 0 : index
    %c0_18 = arith.constant 0 : index
    %39 = vector.load %arg10[%c1_16, %c0_17, %c0_18] : memref<4x2x128xbf16, #tpu.memory_space<vmem>>, vector<1x2x128xbf16>
    %40 = vector.shape_cast %39 : vector<1x2x128xbf16> to vector<2x128xbf16>
    %cst_19 = arith.constant dense<0.000000e+00> : vector<128x128xf32>
    %41 = tpu.matmul %38, %40, %cst_19 {dimension_numbers = #tpu.dot_dimension_numbers<[0], [0], [1], [1], [0, 1, 1, 1], [], []>} : vector<2x128xbf16>, vector<2x128xbf16>, vector<128x128xf32> -> vector<128x128xf32>
    %42 = vector.broadcast %12 : vector<1x128xf32> to vector<128x128xf32>
    %43 = arith.addf %41, %42 : vector<128x128xf32>
    %cst_20 = arith.constant dense<0xFF800000> : vector<128xf32>
    %44 = vector.multi_reduction <maximumf>, %43, %cst_20 [1] : vector<128x128xf32> to vector<128xf32>
    %45 = vector.shape_cast %44 : vector<128xf32> to vector<128x1xf32>
    %46 = vector.broadcast %45 : vector<128x1xf32> to vector<128x128xf32>
    %47 = arith.subf %43, %46 : vector<128x128xf32>
    %48 = math.exp %47 : vector<128x128xf32>
    %cst_21 = arith.constant dense<0.000000e+00> : vector<128xf32>
    %49 = vector.multi_reduction <add>, %48, %cst_21 [1] : vector<128x128xf32> to vector<128xf32>
    %50 = vector.shape_cast %49 : vector<128xf32> to vector<128x1xf32>
    %51 = tpu.reciprocal %50 {approx = true} : vector<128x1xf32> -> vector<128x1xf32>
    %52 = vector.broadcast %51 : vector<128x1xf32> to vector<128x128xf32>
    %53 = arith.mulf %48, %52 : vector<128x128xf32>
    %54 = arith.truncf %53 : vector<128x128xf32> to vector<128x128xbf16>
    %c1_22 = arith.constant 1 : index
    %c0_23 = arith.constant 0 : index
    %c0_24 = arith.constant 0 : index
    %55 = vector.load %arg11[%c1_22, %c0_23, %c0_24] : memref<4x2x128xbf16, #tpu.memory_space<vmem>>, vector<1x2x128xbf16>
    %56 = vector.shape_cast %55 : vector<1x2x128xbf16> to vector<2x128xbf16>
    %cst_25 = arith.constant dense<0.000000e+00> : vector<2x128xf32>
    %57 = tpu.matmul %56, %54, %cst_25 {dimension_numbers = #tpu.dot_dimension_numbers<[1], [1], [0], [0], [0, 0, 1, 0], [], []>} : vector<2x128xbf16>, vector<128x128xbf16>, vector<2x128xf32> -> vector<2x128xf32>
    %c2 = arith.constant 2 : index
    %c0_26 = arith.constant 0 : index
    %58 = vector.load %arg12[%c2, %c0_26] : memref<8x128xf32, #tpu.memory_space<vmem>>, vector<2x128xf32>
    tpu.vector_store %arg12[%c2, %c0_26], %57 {strides = array<i32>} : memref<8x128xf32, #tpu.memory_space<vmem>>, vector<2x128xf32>,
    %c2_27 = arith.constant 2 : index
    %c0_28 = arith.constant 0 : index
    %59 = arith.index_cast %6 : i32 to index
    %60 = vector.load %arg9[%c2_27, %c0_28, %59] : memref<4x2x128xbf16, #tpu.memory_space<vmem>>, vector<1x2x128xbf16>
    %61 = vector.shape_cast %60 : vector<1x2x128xbf16> to vector<2x128xbf16>
    %c2_29 = arith.constant 2 : index
    %c0_30 = arith.constant 0 : index
    %c0_31 = arith.constant 0 : index
    %62 = vector.load %arg10[%c2_29, %c0_30, %c0_31] : memref<4x2x128xbf16, #tpu.memory_space<vmem>>, vector<1x2x128xbf16>
    %63 = vector.shape_cast %62 : vector<1x2x128xbf16> to vector<2x128xbf16>
    %cst_32 = arith.constant dense<0.000000e+00> : vector<128x128xf32>
    %64 = tpu.matmul %61, %63, %cst_32 {dimension_numbers = #tpu.dot_dimension_numbers<[0], [0], [1], [1], [0, 1, 1, 1], [], []>} : vector<2x128xbf16>, vector<2x128xbf16>, vector<128x128xf32> -> vector<128x128xf32>
    %65 = vector.broadcast %12 : vector<1x128xf32> to vector<128x128xf32>
    %66 = arith.addf %64, %65 : vector<128x128xf32>
    %cst_33 = arith.constant dense<0xFF800000> : vector<128xf32>
    %67 = vector.multi_reduction <maximumf>, %66, %cst_33 [1] : vector<128x128xf32> to vector<128xf32>
    %68 = vector.shape_cast %67 : vector<128xf32> to vector<128x1xf32>
    %69 = vector.broadcast %68 : vector<128x1xf32> to vector<128x128xf32>
    %70 = arith.subf %66, %69 : vector<128x128xf32>
    %71 = math.exp %70 : vector<128x128xf32>
    %cst_34 = arith.constant dense<0.000000e+00> : vector<128xf32>
    %72 = vector.multi_reduction <add>, %71, %cst_34 [1] : vector<128x128xf32> to vector<128xf32>
    %73 = vector.shape_cast %72 : vector<128xf32> to vector<128x1xf32>
    %74 = tpu.reciprocal %73 {approx = true} : vector<128x1xf32> -> vector<128x1xf32>
    %75 = vector.broadcast %74 : vector<128x1xf32> to vector<128x128xf32>
    %76 = arith.mulf %71, %75 : vector<128x128xf32>
    %77 = arith.truncf %76 : vector<128x128xf32> to vector<128x128xbf16>
    %c2_35 = arith.constant 2 : index
    %c0_36 = arith.constant 0 : index
    %c0_37 = arith.constant 0 : index
    %78 = vector.load %arg11[%c2_35, %c0_36, %c0_37] : memref<4x2x128xbf16, #tpu.memory_space<vmem>>, vector<1x2x128xbf16>
    %79 = vector.shape_cast %78 : vector<1x2x128xbf16> to vector<2x128xbf16>
    %cst_38 = arith.constant dense<0.000000e+00> : vector<2x128xf32>
    %80 = tpu.matmul %79, %77, %cst_38 {dimension_numbers = #tpu.dot_dimension_numbers<[1], [1], [0], [0], [0, 0, 1, 0], [], []>} : vector<2x128xbf16>, vector<128x128xbf16>, vector<2x128xf32> -> vector<2x128xf32>
    %c4 = arith.constant 4 : index
    %c0_39 = arith.constant 0 : index
    %81 = vector.load %arg12[%c4, %c0_39] : memref<8x128xf32, #tpu.memory_space<vmem>>, vector<2x128xf32>
    tpu.vector_store %arg12[%c4, %c0_39], %80 {strides = array<i32>} : memref<8x128xf32, #tpu.memory_space<vmem>>, vector<2x128xf32>,
    %c3 = arith.constant 3 : index
    %c0_40 = arith.constant 0 : index
    %82 = arith.index_cast %6 : i32 to index
    %83 = vector.load %arg9[%c3, %c0_40, %82] : memref<4x2x128xbf16, #tpu.memory_space<vmem>>, vector<1x2x128xbf16>
    %84 = vector.shape_cast %83 : vector<1x2x128xbf16> to vector<2x128xbf16>
    %c3_41 = arith.constant 3 : index
    %c0_42 = arith.constant 0 : index
    %c0_43 = arith.constant 0 : index
    %85 = vector.load %arg10[%c3_41, %c0_42, %c0_43] : memref<4x2x128xbf16, #tpu.memory_space<vmem>>, vector<1x2x128xbf16>
    %86 = vector.shape_cast %85 : vector<1x2x128xbf16> to vector<2x128xbf16>
    %cst_44 = arith.constant dense<0.000000e+00> : vector<128x128xf32>
    %87 = tpu.matmul %84, %86, %cst_44 {dimension_numbers = #tpu.dot_dimension_numbers<[0], [0], [1], [1], [0, 1, 1, 1], [], []>} : vector<2x128xbf16>, vector<2x128xbf16>, vector<128x128xf32> -> vector<128x128xf32>
    %88 = vector.broadcast %12 : vector<1x128xf32> to vector<128x128xf32>
    %89 = arith.addf %87, %88 : vector<128x128xf32>
    %cst_45 = arith.constant dense<0xFF800000> : vector<128xf32>
    %90 = vector.multi_reduction <maximumf>, %89, %cst_45 [1] : vector<128x128xf32> to vector<128xf32>
    %91 = vector.shape_cast %90 : vector<128xf32> to vector<128x1xf32>
    %92 = vector.broadcast %91 : vector<128x1xf32> to vector<128x128xf32>
    %93 = arith.subf %89, %92 : vector<128x128xf32>
    %94 = math.exp %93 : vector<128x128xf32>
    %cst_46 = arith.constant dense<0.000000e+00> : vector<128xf32>
    %95 = vector.multi_reduction <add>, %94, %cst_46 [1] : vector<128x128xf32> to vector<128xf32>
    %96 = vector.shape_cast %95 : vector<128xf32> to vector<128x1xf32>
    %97 = tpu.reciprocal %96 {approx = true} : vector<128x1xf32> -> vector<128x1xf32>
    %98 = vector.broadcast %97 : vector<128x1xf32> to vector<128x128xf32>
    %99 = arith.mulf %94, %98 : vector<128x128xf32>
    %100 = arith.truncf %99 : vector<128x128xf32> to vector<128x128xbf16>
    %c3_47 = arith.constant 3 : index
    %c0_48 = arith.constant 0 : index
    %c0_49 = arith.constant 0 : index
    %101 = vector.load %arg11[%c3_47, %c0_48, %c0_49] : memref<4x2x128xbf16, #tpu.memory_space<vmem>>, vector<1x2x128xbf16>
    %102 = vector.shape_cast %101 : vector<1x2x128xbf16> to vector<2x128xbf16>
    %cst_50 = arith.constant dense<0.000000e+00> : vector<2x128xf32>
    %103 = tpu.matmul %102, %100, %cst_50 {dimension_numbers = #tpu.dot_dimension_numbers<[1], [1], [0], [0], [0, 0, 1, 0], [], []>} : vector<2x128xbf16>, vector<128x128xbf16>, vector<2x128xf32> -> vector<2x128xf32>
    %c6 = arith.constant 6 : index
    %c0_51 = arith.constant 0 : index
    %104 = vector.load %arg12[%c6, %c0_51] : memref<8x128xf32, #tpu.memory_space<vmem>>, vector<2x128xf32>
    tpu.vector_store %arg12[%c6, %c0_51], %103 {strides = array<i32>} : memref<8x128xf32, #tpu.memory_space<vmem>>, vector<2x128xf32>,
    %c0_52 = arith.constant 0 : index
    %c0_53 = arith.constant 0 : index
    %105 = vector.load %arg6[%c0_52, %c0_53] : memref<8x8xbf16, #tpu.memory_space<vmem>>, vector<8x8xbf16>
    %c0_54 = arith.constant 0 : index
    %c0_55 = arith.constant 0 : index
    %106 = vector.load %arg12[%c0_54, %c0_55] : memref<8x128xf32, #tpu.memory_space<vmem>>, vector<8x128xf32>
    %107 = arith.truncf %106 : vector<8x128xf32> to vector<8x128xbf16>
    %cst_56 = arith.constant dense<0.000000e+00> : vector<8x128xf32>
    %108 = tpu.matmul %105, %107, %cst_56 {dimension_numbers = #tpu.dot_dimension_numbers<[1], [0], [0], [1], [0, 0, 1, 1], [], []>} : vector<8x8xbf16>, vector<8x128xbf16>, vector<8x128xf32> -> vector<8x128xf32>
    %c0_57 = arith.constant 0 : index
    %c0_58 = arith.constant 0 : index
    %109 = vector.load %arg7[%c0_57, %c0_58] : memref<8x1xf32, #tpu.memory_space<vmem>>, vector<8x1xf32>
    %110 = vector.broadcast %109 : vector<8x1xf32> to vector<8x128xf32>
    %111 = arith.addf %108, %110 : vector<8x128xf32>
    %c0_59 = arith.constant 0 : index
    %c0_60 = arith.constant 0 : index
    %c0_61 = arith.constant 0 : index
    %112 = vector.load %arg8[%c0_59, %c0_60, %c0_61] : memref<1x8x128xf32, #tpu.memory_space<vmem>>, vector<1x8x128xf32>
    %113 = vector.shape_cast %112 : vector<1x8x128xf32> to vector<8x128xf32>
    %114 = vector.shape_cast %111 : vector<8x128xf32> to vector<1x8x128xf32>
    tpu.vector_store %arg8[%c0_59, %c0_60, %c0_61], %114 {strides = array<i32>} : memref<1x8x128xf32, #tpu.memory_space<vmem>>, vector<1x8x128xf32>,
    return
  }
  func.func @transform_0(%arg0: i32, %arg1: i32, %arg2: i32) -> (i32, i32, i32) {
    %c0_i32 = arith.constant 0 : i32
    %c0_i32_0 = arith.constant 0 : i32
    %c0_i32_1 = arith.constant 0 : i32
    return %arg0, %c0_i32, %c0_i32_0 : i32, i32, i32
  }
  func.func @transform_1(%arg0: i32, %arg1: i32, %arg2: i32) -> (i32, i32, i32, i32) {
    %c0_i32 = arith.constant 0 : i32
    %c0_i32_0 = arith.constant 0 : i32
    %c0_i32_1 = arith.constant 0 : i32
    %c0_i32_2 = arith.constant 0 : i32
    %c0_i32_3 = arith.constant 0 : i32
    return %c0_i32, %c0_i32_0, %c0_i32_1, %c0_i32_2 : i32, i32, i32, i32
  }
  func.func @transform_2(%arg0: i32, %arg1: i32, %arg2: i32) -> (i32, i32, i32, i32) {
    %c0_i32 = arith.constant 0 : i32
    %c0_i32_0 = arith.constant 0 : i32
    %c0_i32_1 = arith.constant 0 : i32
    %c0_i32_2 = arith.constant 0 : i32
    %c0_i32_3 = arith.constant 0 : i32
    return %c0_i32, %c0_i32_0, %c0_i32_1, %c0_i32_2 : i32, i32, i32, i32
  }
  func.func @transform_3(%arg0: i32, %arg1: i32, %arg2: i32) -> (i32, i32) {
    %c0_i32 = arith.constant 0 : i32
    %c0_i32_0 = arith.constant 0 : i32
    %c0_i32_1 = arith.constant 0 : i32
    return %c0_i32, %c0_i32_0 : i32, i32
  }
  func.func @transform_4(%arg0: i32, %arg1: i32, %arg2: i32) -> (i32, i32) {
    %c0_i32 = arith.constant 0 : i32
    %c0_i32_0 = arith.constant 0 : i32
    %c0_i32_1 = arith.constant 0 : i32
    return %c0_i32, %c0_i32_0 : i32, i32
  }
  func.func @transform_5(%arg0: i32, %arg1: i32, %arg2: i32) -> (i32, i32, i32) {
    %c1_i32 = arith.constant 1 : i32
    %0 = arith.muli %arg1, %c1_i32 : i32
    %1 = arith.addi %0, %arg2 : i32
    %c0_i32 = arith.constant 0 : i32
    %c0_i32_0 = arith.constant 0 : i32
    return %arg0, %c0_i32, %1 : i32, i32, i32
  }
}

</mosaic_0001>

<bundles_post_ra>
// kernel: tpu_custom_call.1
= control target key start
LH: loop header
LB: loop body
LE: loop exit
PB: predicated region body
PF: predicated region fallthrough
CT: control target
= control target key end

     0   :  { %10 = vsyncpa [#allocation7], 0  ;;  %s4471_s0 = inlined_call_operand.vmem [shape: bf16[2,8,128], index: 0, kind: input, shape index: {}]   ;;  %s4472_s1 = inlined_call_operand.vmem [shape: bf16[3,4,2,8], index: 1, kind: input, shape index: {}]   ;;  %s4473_s2 = inlined_call_operand.vmem [shape: f32[3,4,2,1], index: 2, kind: input, shape index: {}]   ;;  %s4474_s3 = inlined_call_operand.vmem [shape: bf16[8,8], index: 3, kind: input, shape index: {}]   ;;  %s4475_s4 = inlined_call_operand.vmem [shape: f32[8,1], index: 4, kind: input, shape index: {}]   ;;  %s4476_s5 = inlined_call_operand.hbm [shape: f32[2,8,128], index: 5, kind: output, shape index: {}]  }
   0x1   :  { %12 = vsyncpa [#allocation7 + $0x1], 0  ;;  %s3361_s18 = smov 0   ;;  %s3363_s19 = smov 0  }
   0x2   :  { %s3365_s20 = smov 0   ;;  %s3367_s21 = smov 0  }
   0x3   :  { %s3369_s22 = smov 0   ;;  %s3371_s23 = smov 0  }
   0x4 LB: > { %s2502_s24 = sadd.s32 4294967295, %s3324_s23   ;;  %s2503_s25 = sadd.s32 4294967294, %s3324_s23   ;;  %s3324_s23 = sphi %s3371_s23, %s18_s23   ;;  %s3320_s22 = sphi %s3369_s22, %s4512_s22   ;;  %s3316_s21 = sphi %s3367_s21, %s4511_s21   ;;  %s3312_s20 = sphi %s3365_s20, %s4510_s20   ;;  %s3308_s19 = sphi %s3363_s19, %s4509_s19   ;;  %s3304_s18 = sphi %s3361_s18, %s4508_s18  }
   0x5   : > { %s37_s26 = sadd.s32 1, %s3320_s22  ;;  %s158_s27 = sadd.s32 1, %s3312_s20 }
   0x6   : > { %p39_p0 = scmp.ge.s32.totalorder %s37_s26, 2  ;;  %p168_p1 = scmp.ne.s32.totalorder %s3312_s20, %s3308_s19 }
   0x7   : > { %p169_p2 = scmp.eq.s32.totalorder %s2502_s24, 1  ;;  %p174_p3 = scmp.ne.s32.totalorder %s3308_s19, %s3304_s18 }
   0x8   : > { %s4514_s26 = smov (%p39_p0, %s37_s26), 0  ;;  %p175_p5 = scmp.eq.s32.totalorder %s2503_s25, 1 }
   0x9   : > { %p3401_p4 = por %p169_p2, %p168_p1  ;;  %s153_s29 = ssub.s32 %s3320_s22, %s4514_s26 }
   0xa   : > { %p2506_p6 = scmp.ge.s32.totalorder %s3324_s23, 1  ;;  %p156_p7 = scmp.eq.s32.totalorder %s153_s29, 0 }
   0xb   : > { %p3408_p8 = por %p175_p5, %p174_p3  ;;  %p212_p9 = scmp.lt.s32.totalorder %s3324_s23, 3 }
   0xc   : > { %s3414_s6 = scalar_select %p156_p7, %s3312_s20, %s158_s27  }
   0xd   : > { %p213_p10 = pnand %p2506_p6, %p212_p9 }
   0xf   : > { %216 = sbr.rel (%p213_p10) target bundleno = 2222 (0x8ae), region = 40 }
  0x14   : > { %p239_p11 = scmp.lt.s32.totalorder %s3316_s21, 1  ;;  %v4477_v0 = vmov 0.0   ;;  %vm3327_vm0 = vmmov 0   ;;  %v3328_v1 = vmov 0   ;;  %v254_v2 = vld [vmem:[%s4473_s2] sm:$0x3]  ;;  %v250_v14 = vlaneseq }
  0x15   : > { %2681 = vmatprep.subr.bf16.mxu0 %v4477_v0  ;;  %2687 = vmatprep.subr.bf16.mxu1 %v4477_v0  ;;  %v2511_v3 = vld [vmem:[%s4473_s2 + $0x8] sm:$0x3]  ;;  %vm264_vm1 = vcmask 1043456   ;;  %v2517_v6 = vld [vmem:[%s4473_s2 + $0x2] sm:$0x3]  ;;  %vm260_vm2 = vcmask 64512  }
  0x16   : > { %s240_s7 = scalar_select %p239_p11, %s3316_s21, 1  ;;  %2683 = vmatprep.mubr.msk.bf16.mxu0 %vm3327_vm0, %v4477_v0  ;;  %2689 = vmatprep.mubr.msk.bf16.mxu1 %vm3327_vm0, %v4477_v0  ;;  %v2520_v7 = vld [vmem:[%s4473_s2 + $0xa] sm:$0x3]  ;;  %v253_v8 = vld [vmem:[%s4472_s1] sm:$0x1]  ;;  %v3494_v15 = vand.u32 127, %v250_v14 }
  0x17   : > { %2974 = vset.pattern.permute.xlu0 %v3328_v1  ;;  %2975 = vset.pattern.permute.xlu1 %v3328_v1  ;;  %v2510_v9 = vld [vmem:[%s4472_s1 + $0x4] sm:$0x1]  ;;  %v2513_v10 = vld [vmem:[%s4472_s1 + $0x8] sm:$0x1]  ;;  %v2516_v11 = vld [vmem:[%s4472_s1 + $0x1] sm:$0x1] }
  0x18   : > { %s2508_s12 = sshll.u32 %s240_s7, 2  ;;  %257 = vperm.xlu0 %2974, %v254_v2   ;;  %314 = vperm.xlu1 %2975, %v2511_v3   ;;  %v2519_v12 = vld [vmem:[%s4472_s1 + $0x5] sm:$0x1]  ;;  %v2525_v13 = vld [vmem:[%s4472_s1 + $0x2] sm:$0x1]  ;;  %vm252_vm3 = vcmp.lt.s32.totalorder %v3494_v15, 64 }
  0x19   : > { %s242_s15 = scalar_lea.vmem %s4471_s0, %s2508_s12  ;;  %vm415_vm4 = vcmask 1041408   ;;  %v2522_v56 = vld [vmem:[%s4472_s1 + $0x9] sm:$0x1]  ;;  %v2528_v57 = vld [vmem:[%s4472_s1 + $0x6] sm:$0x1]  ;;  %vm1034_vm5 = vcmask 1040384  }
  0x1a   : > { %v249_v4 = vld [vmem:[%s242_s15] sm:$0xf]  ;;  %v2540_v59 = vld [vmem:[%s4472_s1 + $0xb] sm:$0x1]  ;;  %v2531_v60 = vld [vmem:[%s4472_s1 + $0xa] sm:$0x1] }
  0x1b   : > { %v3434_v5 = vsel %vm264_vm1, %v249_v4, 0  ;;  %v2534_v58 = vld [vmem:[%s4472_s1 + $0x3] sm:$0x1]  ;;  %v2537_v61 = vld [vmem:[%s4472_s1 + $0x7] sm:$0x1]  ;;  %vm1009_vm6 = vcmask 15360  }
  0x1c   : > { %2682 = vmatpush3.bf16.msra.mxu0 %v3434_v5  ;;  %2688 = vmatpush3.bf16.msra.mxu1 %v3434_v5  ;;  %s236_s25 = sand.u32 1, %s3308_s19   ;;  %s2580_s29 = sshll.u32 %s3316_s21, 7 }
  0x1d   : > { %2693 = vmatprep.subr.bf16.mxu0 %v4477_v0  ;;  %2699 = vmatprep.subr.bf16.mxu1 %v4477_v0  ;;  %s2507_s27 = sshll.u32 %s236_s25, 3  ;;  %s4425_s11 = scalar_lea.hbm %s4476_s5, %s2580_s29 }
  0x1e   : > { %442 = vperm.xlu0 %2974, %v2517_v6   ;;  %494 = vperm.xlu1 %2975, %v2520_v7   ;;  %s238_s7 = scalar_lea.vmem [#allocation6], %s2507_s27  ;;  %s2408_s12 = scalar_lea.sflag [#allocation7], %s236_s25 }
  0x1f   : > { %2684 = vmatmul.mubr.msk.bf16.vlgmr.msra.gmra.mxu0 %vm260_vm2, %v253_v8  ;;  %2690 = vmatmul.mubr.msk.bf16.vlgmr.msra.gmra.mxu1 %vm260_vm2, %v2510_v9  ;;  %s2423_s8 = sshll.u32 %s238_s7, 4  ;;  %s3330_s13 = smov [#allocation6]   ;;  %s4427_s8 = int_to_ptr.vmem [resolvable:$true] %s2423_s8 }
  0x20   : > { %2694 = vmatpush3.bf16.msra.mxu0 %v3434_v5  ;;  %2700 = vmatpush3.bf16.msra.mxu1 %v3434_v5  ;;  %s3248_s21 = scalar_lea.vmem %s4427_s8, 128  ;;  %s3252_s14 = sshll.u32 %s3330_s13, 4  ;;  %s3253_s14 = int_to_ptr.vmem [resolvable:$false] %s3252_s14 }
  0x21   : > { %2695 = vmatprep.mubr.msk.bf16.mxu0 %vm3327_vm0, %v4477_v0  ;;  %2701 = vmatprep.mubr.msk.bf16.mxu1 %vm3327_vm0, %v4477_v0  ;;  %p3249_p12 = scmp.ne.s32.totalorder %s4427_s8, %s3248_s21  ;;  %s3254_s15 = scalar_lea.vmem %s3253_s14, 256 }
  0x22   : > { %2705 = vmatprep.subr.bf16.mxu0 %v4477_v0  ;;  %2711 = vmatprep.subr.bf16.mxu1 %v4477_v0  ;;  %p3255_p1 = scmp.lt.s32.totalorder %s4427_s8, %s3253_s14  ;;  %p3256_p2 = scmp.lt.s32.totalorder %s3254_s15, %s3248_s21 }
  0x23   : > { %p3250_p13 = pnand %p3249_p12, %p3401_p4 }
  0x24   : > { %p3257_p3 = por %p3256_p2, %p3255_p1 }
  0x25   : > { %p3251_p0 = pneg %p3250_p13 }
  0x27   : > { %2696 = vmatmul.mubr.msk.bf16.vlgmr.msra.gmra.mxu0 %vm260_vm2, %v2513_v10  ;;  %2702 = vmatmul.mubr.msk.bf16.vlgmr.msra.gmra.mxu1 %vm260_vm2, %v2516_v11  ;;  %p3258_p5 = pnand %p3257_p3, %p3251_p0 }
  0x28   : > { %2706 = vmatpush3.bf16.msra.mxu0 %v3434_v5  ;;  %2707 = vmatprep.mubr.msk.bf16.mxu0 %vm3327_vm0, %v4477_v0 }
  0x29   : > { %2717 = vmatprep.subr.bf16.mxu0 %v4477_v0  ;;  %2712 = vmatpush3.bf16.msra.mxu1 %v3434_v5 }
  0x2a   : > { %2713 = vmatprep.mubr.msk.bf16.mxu1 %vm3327_vm0, %v4477_v0  ;;  %2723 = vmatprep.subr.bf16.mxu1 %v4477_v0 }
  0x2f   : > { %2708 = vmatmul.mubr.msk.bf16.vlgmr.msra.gmra.mxu0 %vm260_vm2, %v2519_v12  ;;  %2714 = vmatmul.mubr.msk.bf16.vlgmr.msra.gmra.mxu1 %vm260_vm2, %v2522_v56 }
  0x30   : > { %2718 = vmatpush3.bf16.msra.mxu0 %v3434_v5  ;;  %2719 = vmatprep.mubr.msk.bf16.mxu0 %vm3327_vm0, %v4477_v0 }
  0x31   : > { %2729 = vmatprep.subr.bf16.mxu0 %v4477_v0  ;;  %2724 = vmatpush3.bf16.msra.mxu1 %v3434_v5 }
  0x32   : > { %2725 = vmatprep.mubr.msk.bf16.mxu1 %vm3327_vm0, %v4477_v0  ;;  %2735 = vmatprep.subr.bf16.mxu1 %v4477_v0 }
  0x37   : > { %2720 = vmatmul.mubr.msk.bf16.vlgmr.msra.gmra.mxu0 %vm260_vm2, %v2525_v13  ;;  %2726 = vmatmul.mubr.msk.bf16.vlgmr.msra.gmra.mxu1 %vm260_vm2, %v2528_v57 }
  0x38   : > { %2730 = vmatpush3.bf16.msra.mxu0 %v3434_v5  ;;  %2731 = vmatprep.mubr.msk.bf16.mxu0 %vm3327_vm0, %v4477_v0 }
  0x39   : > { %2741 = vmatprep.subr.bf16.mxu0 %v4477_v0  ;;  %2736 = vmatpush3.bf16.msra.mxu1 %v3434_v5 }
  0x3a   : > { %2737 = vmatprep.mubr.msk.bf16.mxu1 %vm3327_vm0, %v4477_v0  ;;  %2747 = vmatprep.subr.bf16.mxu1 %v4477_v0 }
  0x3f   : > { %2738 = vmatmul.mubr.msk.bf16.vlgmr.msra.gmra.mxu1 %vm260_vm2, %v2534_v58  ;;  %2732 = vmatmul.mubr.msk.bf16.vlgmr.msra.gmra.mxu0 %vm260_vm2, %v2531_v60 }
  0x40   : > { %2748 = vmatpush3.bf16.msra.mxu1 %v3434_v5  ;;  %2749 = vmatprep.mubr.msk.bf16.mxu1 %vm3327_vm0, %v4477_v0 }
  0x41   : > { %2742 = vmatpush3.bf16.msra.mxu0 %v3434_v5  ;;  %2743 = vmatprep.mubr.msk.bf16.mxu0 %vm3327_vm0, %v4477_v0 }
  0x47   : > { %2750 = vmatmul.mubr.msk.bf16.vlgmr.msra.gmra.mxu1 %vm260_vm2, %v2540_v59  ;;  %2744 = vmatmul.mubr.msk.bf16.vlgmr.msra.gmra.mxu0 %vm260_vm2, %v2537_v61 }
  0x93   : > { %v315_v16 = vpop.permute.xlu1 %314  ;;  %v258_v17 = vpop.permute.xlu0 %257 }
  0x99   : > { %v443_v33 = vpop.permute.xlu0 %442  ;;  %v495_v44 = vpop.permute.xlu1 %494 }
  0xdf   : > { %v302_v18 = vpop.f32.mrf.mxu0  ;;  %v354_v19 = vpop.f32.mrf.mxu1 }
  0xe0   : > { %v303_v20 = vadd.f32 %v302_v18, %v258_v17  ;;  %v355_v21 = vadd.f32 %v354_v19, %v315_v16 }
  0xe1   : > { %v2685_v22 = vpop.f32.mrf.mxu0  ;;  %v2691_v23 = vpop.f32.mrf.mxu1 }
  0xe2   : > { %v3499_v24 = vsel %vm252_vm3, %v303_v20, 0.0  ;;  %v3503_v25 = vsel %vm252_vm3, %v355_v21, 0.0 }
  0xe3   : > { %v305_v26 = vpop.f32.mrf.mxu0  ;;  %v357_v27 = vpop.f32.mrf.mxu1  ;;  %v414_v28 = vmul.f32 %v3499_v24, %v3499_v24  ;;  %v421_v29 = vmul.f32 %v3503_v25, %v3503_v25 }
  0xe5   : > { %v2686_v30 = vpop.f32.mrf.mxu0  ;;  %v2692_v31 = vpop.f32.mrf.mxu1  ;;  %v416_v32 = vsel %vm415_vm4, %v414_v28, 0.0  ;;  %v422_v36 = vsel %vm415_vm4, %v421_v29, 0.0  ;;  %v2526_v29 = vld [vmem:[%s4473_s2 + $0x4] sm:$0x3] }
  0xe6   : > { %417 = vadd.xlane.f32.xlu0 %v416_v32 }
  0xe7   : > { %v3510_v34 = vpop.f32.mrf.mxu0  ;;  %v482_v35 = vpop.f32.mrf.mxu1 }
  0xe8   : > { %4487 = vst [vmem:[#allocation9_spill] sm:$0xff] %v3510_v34  ;;  %v483_v37 = vadd.f32 %v482_v35, %v443_v33 }
  0xe9   : > { %v2697_v38 = vpop.f32.mrf.mxu0  ;;  %v2703_v39 = vpop.f32.mrf.mxu1 }
  0xea   : > { %v3515_v40 = vsel %vm252_vm3, %v483_v37, 0.0  ;;  %423 = vadd.xlane.f32.xlu0 %v422_v36 }
  0xeb   : > { %v409_v41 = vpop.f32.mrf.mxu0  ;;  %v485_v42 = vpop.f32.mrf.mxu1  ;;  %v594_v43 = vmul.f32 %v3515_v40, %v3515_v40 }
  0xed   : > { %v2698_v45 = vpop.f32.mrf.mxu0  ;;  %v2704_v46 = vpop.f32.mrf.mxu1  ;;  %v595_v47 = vsel %vm415_vm4, %v594_v43, 0.0 }
  0xee   : > { %596 = vadd.xlane.f32.xlu1 %v595_v47 }
  0xef   : > { %v534_v48 = vpop.f32.mrf.mxu0  ;;  %v3575_v33 = vpop.f32.mrf.mxu1 }
  0xf0   : > { %v535_v49 = vadd.f32 %v534_v48, %v495_v44  ;;  %4488 = vst [vmem:[#allocation10_spill] sm:$0xff] %v3575_v33 }
  0xf1   : > { %v2709_v50 = vpop.f32.mrf.mxu0  ;;  %v2715_v35 = vpop.f32.mrf.mxu1 }
  0xf2   : > { %v593_v51 = vsel %vm252_vm3, %v535_v49, 0.0 }
  0xf3   : > { %v600_v52 = vmul.f32 %v593_v51, %v593_v51  ;;  %v537_v53 = vpop.f32.mrf.mxu0  ;;  %v589_v36 = vpop.f32.mrf.mxu1 }
  0xf5   : > { %v601_v54 = vsel %vm415_vm4, %v600_v52, 0.0  ;;  %v2710_v55 = vpop.f32.mrf.mxu0  ;;  %v2716_v37 = vpop.f32.mrf.mxu1 }
  0xf6   : > { %602 = vadd.xlane.f32.xlu0 %v601_v54 }
  0xf7   : > { %v3570_v28 = vpop.f32.mrf.mxu0  ;;  %v3577_v38 = vpop.f32.mrf.mxu1 }
  0xf9   : > { %v2721_v30 = vpop.f32.mrf.mxu0  ;;  %v2727_v39 = vpop.f32.mrf.mxu1 }
  0xfb   : > { %v667_v31 = vpop.f32.mrf.mxu0 }
  0xfd   : > { %v2722_v32 = vpop.f32.mrf.mxu0 }
  0xff   : > { %v3583_v48 = vpop.f32.mrf.mxu0 }
 0x100   : > { %4490 = vst [vmem:[#allocation12_spill] sm:$0xff] %v3583_v48 }
 0x101   : > { %v2733_v50 = vpop.f32.mrf.mxu0 }
 0x103   : > { %v771_v52 = vpop.f32.mrf.mxu0 }
 0x105   : > { %v2734_v53 = vpop.f32.mrf.mxu0 }
 0x107   : > { %v3585_v54 = vpop.f32.mrf.mxu0 }
 0x108   : > { %4491 = vst [vmem:[#allocation13_spill] sm:$0xff] %v3585_v54 }
 0x109   : > { %v2745_v55 = vpop.f32.mrf.mxu0 }
 0x10b   : > { %v901_v56 = vpop.f32.mrf.mxu0 }
 0x10d   : > { %v2746_v57 = vpop.f32.mrf.mxu0 }
 0x16f   : > { %v418_v62 = vpop.xlane.xlu0 %417 }
 0x170   : > { %v419_v63 = vmax.f32 %v418_v62, 1e-24 }
 0x172   : > { %2976 = vrsqrt.f32 %v419_v63 }
 0x173   : > { %v424_v1 = vpop.xlane.xlu0 %423 }
 0x174   : > { %v425_v2 = vmax.f32 %v424_v1, 1e-24 }
 0x176   : > { %2978 = vrsqrt.f32 %v425_v2 }
 0x177   : > { %v597_v3 = vpop.xlane.xlu1 %596 }
 0x178   : > { %v598_v4 = vmax.f32 %v597_v3, 1e-24 }
 0x17a   : > { %2980 = vrsqrt.f32 %v598_v4 }
 0x17f   : > { %v2977_v6 = vpop.eup %2976  ;;  %v603_v5 = vpop.xlane.xlu0 %602 }
 0x180   : > { %v427_v7 = vmul.f32 10.0, %v2977_v6  ;;  %v604_v8 = vmax.f32 %v603_v5, 1e-24 }
 0x182   : > { %v428_v9 = vmul.f32 %v427_v7, %v3499_v24  ;;  %2982 = vrsqrt.f32 %v604_v8 }
 0x183   : > { %v2979_v10 = vpop.eup %2978 }
 0x184   : > { %v429_v11 = vpack.c.bf16 %v428_v9, %v428_v9  ;;  %v431_v12 = vmul.f32 %v2979_v10, %v3503_v25 }
 0x186   : > { %430 = vst [vmem:[#allocation2] sm:$0x1] %v429_v11  ;;  %v432_v13 = vpack.c.bf16 %v431_v12, %v431_v12  ;;  %v3329_v11 = vmov -1e+30  }
 0x187   : > { %v2981_v14 = vpop.eup %2980  ;;  %v3609_v12 = vsel %vm252_vm3, 0.0, %v3329_v11 }
 0x188   : > { %433 = vst [vmem:[#allocation3] sm:$0x1] %v432_v13  ;;  %v606_v16 = vmul.f32 10.0, %v2981_v14  ;;  %4492 = vst [vmem:[#allocation14_spill] sm:$0xff] %v3609_v12 }
 0x18a   : > { %v607_v17 = vmul.f32 %v606_v16, %v3515_v40  ;;  %v719_v40 = vpop.f32.mrf.mxu1 }
 0x18c   : > { %v608_v18 = vpack.c.bf16 %v607_v17, %v607_v17  ;;  %v2728_v41 = vpop.f32.mrf.mxu1 }
 0x18d   : > { %v991_v19 = vld [vmem:[#allocation2] sm:$0x1] }
 0x18e   : > { %610 = vst [vmem:[#allocation2 + $0x1] sm:$0x1] %v608_v18  ;;  %993 = vxpose.xlu1.c.b16.start.end [1/1] (short) %v991_v19, 128  ;;  %v3579_v42 = vpop.f32.mrf.mxu1 }
 0x18f   : > { %v2983_v20 = vpop.eup %2982  ;;  %v992_v21 = vld [vmem:[#allocation3] sm:$0x1] }
 0x190   : > { %v611_v22 = vmul.f32 %v2983_v20, %v593_v51  ;;  %2911 = vmatprep.subr.msk.bf16.mxu1 %vm1034_vm5, %v992_v21  ;;  %v1036_v23 = vsel %vm1034_vm5, %v992_v21, 0  ;;  %v2739_v43 = vpop.f32.mrf.mxu1 }
 0x191   : > { %2754 = vmatpush3.bf16.msra.mxu1 %v1036_v23 }
 0x192   : > { %v612_v24 = vpack.c.bf16 %v611_v22, %v611_v22  ;;  %2771 = vmatprep.subr.bf16.mxu1 %v4477_v0  ;;  %v849_v44 = vpop.f32.mrf.mxu1 }
 0x194   : > { %614 = vst [vmem:[#allocation3 + $0x1] sm:$0x1] %v612_v24  ;;  %v2740_v45 = vpop.f32.mrf.mxu1 }
 0x195   : > { %v2551_v25 = vld [vmem:[#allocation2 + $0x1] sm:$0x1] }
 0x196   : > { %1334 = vxpose.xlu0.c.b16.start.end [1/1] (short) %v2551_v25, 128  ;;  %v3581_v46 = vpop.f32.mrf.mxu1 }
 0x197   : > { %4489 = vst [vmem:[#allocation11_spill] sm:$0xff] %v3581_v46 }
 0x198   : > { %v2751_v47 = vpop.f32.mrf.mxu1 }
 0x19a   : > { %v953_v49 = vpop.f32.mrf.mxu1 }
 0x19b   : > { %v1333_v26 = vld [vmem:[#allocation3 + $0x1] sm:$0x1] }
 0x19c   : > { %2912 = vmatprep.subr.msk.bf16.mxu0 %vm1034_vm5, %v1333_v26  ;;  %v1375_v27 = vsel %vm1034_vm5, %v1333_v26, 0  ;;  %v2752_v51 = vpop.f32.mrf.mxu1 }
 0x19d   : > { %2792 = vmatpush3.bf16.msra.mxu0 %v1375_v27 }
 0x19e   : > { %2809 = vmatprep.subr.bf16.mxu0 %v4477_v0 }
 0x1ae   : > { %624 = vperm.xlu1 %2975, %v2526_v29  }
 0x1f0   : > { %v1001_v58 = vpop.trf.xlu1 }
 0x1f1   : > { %2755 = vmatprep.mubr.msk.bf16.mxu1 %vm1009_vm6, %v1001_v58 }
 0x1f4   : > { %v1002_v59 = vpop.trf.xlu1 }
 0x1f5   : > { %2756 = vmatmul.mubr.msk.bf16.vlgmr.msra.gmra.mxu1 %vm1009_vm6, %v1002_v59 }
 0x1f8   : > { %v1003_v60 = vpop.trf.xlu1  ;;  %v1342_v61 = vpop.trf.xlu0 }
 0x1f9   : > { %2759 = vmatprep.mubr.msk.bf16.mxu1 %vm1009_vm6, %v1003_v60  ;;  %2793 = vmatprep.mubr.msk.bf16.mxu0 %vm1009_vm6, %v1342_v61 }
 0x1fc   : > { %v1004_v62 = vpop.trf.xlu1  ;;  %v1343_v63 = vpop.trf.xlu0 }
 0x1fd   : > { %2760 = vmatmul.mubr.msk.bf16.gmra.mxu1 %vm1009_vm6, %v1004_v62  ;;  %2794 = vmatmul.mubr.msk.bf16.vlgmr.msra.gmra.mxu0 %vm1009_vm6, %v1343_v63 }
 0x200   : > { %v1005_v1 = vpop.trf.xlu1  ;;  %v1344_v2 = vpop.trf.xlu0 }
 0x201   : > { %2763 = vmatprep.mubr.msk.bf16.mxu1 %vm1009_vm6, %v1005_v1  ;;  %2797 = vmatprep.mubr.msk.bf16.mxu0 %vm1009_vm6, %v1344_v2 }
 0x204   : > { %v1006_v3 = vpop.trf.xlu1  ;;  %v1345_v4 = vpop.trf.xlu0 }
 0x205   : > { %2764 = vmatmul.mubr.msk.bf16.gmra.mxu1 %vm1009_vm6, %v1006_v3  ;;  %2798 = vmatmul.mubr.msk.bf16.gmra.mxu0 %vm1009_vm6, %v1345_v4 }
 0x208   : > { %v1007_v6 = vpop.trf.xlu1  ;;  %v1346_v5 = vpop.trf.xlu0 }
 0x209   : > { %2767 = vmatprep.mubr.msk.bf16.mxu1 %vm1009_vm6, %v1007_v6  ;;  %2801 = vmatprep.mubr.msk.bf16.mxu0 %vm1009_vm6, %v1346_v5 }
 0x20c   : > { %v1008_v7 = vpop.trf.xlu1  ;;  %v1347_v8 = vpop.trf.xlu0 }
 0x20d   : > { %2768 = vmatmul.mubr.msk.bf16.gmra.mxu1 %vm1009_vm6, %v1008_v7  ;;  %2802 = vmatmul.mubr.msk.bf16.gmra.mxu0 %vm1009_vm6, %v1347_v8 }
 0x20e   : > { %2787 = vmatprep.mubr.msk.bf16.mxu1 %vm3327_vm0, %v4477_v0 }
 0x210   : > { %v1348_v9 = vpop.trf.xlu0 }
 0x211   : > { %2805 = vmatprep.mubr.msk.bf16.mxu0 %vm1009_vm6, %v1348_v9 }
 0x214   : > { %v1349_v10 = vpop.trf.xlu0 }
 0x215   : > { %2806 = vmatmul.mubr.msk.bf16.gmra.mxu0 %vm1009_vm6, %v1349_v10 }
 0x216   : > { %2825 = vmatprep.mubr.msk.bf16.mxu0 %vm3327_vm0, %v4477_v0 }
 0x2b5   : > { %v2757_v13 = vpop.f32.mrf.mxu1 }
 0x2b6   : > { %v3612_v14 = vadd.f32 %v2757_v13, %v3609_v12 }
 0x2b7   : > { %v1072_v16 = vpop.f32.mrf.mxu1 }
 0x2b8   : > { %1139 = vmax.xlane.f32.xlu1 %v3612_v14  ;;  %v3616_v18 = vadd.f32 %v1072_v16, %v3609_v12 }
 0x2b9   : > { %v2758_v17 = vpop.f32.mrf.mxu1 }
 0x2ba   : > { %v3619_v19 = vadd.f32 %v2758_v17, %v3609_v12 }
 0x2bb   : > { %v1075_v20 = vpop.f32.mrf.mxu1 }
 0x2bc   : > { %1135 = vmax.xlane.f32.xlu1 %v3616_v18  ;;  %1141 = vmax.xlane.f32.xlu0 %v3619_v19  ;;  %v3624_v23 = vadd.f32 %v1075_v20, %v3609_v12 }
 0x2bd   : > { %v2761_v21 = vpop.f32.mrf.mxu1  ;;  %v2795_v22 = vpop.f32.mrf.mxu0 }
 0x2be   : > { %v3627_v24 = vadd.f32 %v2761_v21, %v3609_v12  ;;  %v3632_v27 = vadd.f32 %v2795_v22, %v3609_v12 }
 0x2bf   : > { %v1088_v25 = vpop.f32.mrf.mxu1  ;;  %v3629_v26 = vpop.f32.mrf.mxu0 }
 0x2c0   : > { %1147 = vmax.xlane.f32.xlu1 %v3627_v24  ;;  %1137 = vmax.xlane.f32.xlu0 %v3624_v23  ;;  %v3642_v36 = vadd.f32 %v1088_v25, %v3609_v12  ;;  %v3723_v22 = vadd.f32 %v3629_v26, %v3609_v12 }
 0x2c1   : > { %v2762_v29 = vpop.f32.mrf.mxu1  ;;  %v2796_v31 = vpop.f32.mrf.mxu0 }
 0x2c2   : > { %v3637_v30 = vadd.f32 %v2762_v29, %v3609_v12  ;;  %v3645_v37 = vadd.f32 %v2796_v31, %v3609_v12 }
 0x2c3   : > { %v1091_v32 = vpop.f32.mrf.mxu1  ;;  %v1414_v39 = vpop.f32.mrf.mxu0 }
 0x2c4   : > { %1149 = vmax.xlane.f32.xlu0 %v3637_v30  ;;  %1478 = vmax.xlane.f32.xlu1 %v3632_v27  ;;  %v3653_v44 = vadd.f32 %v1091_v32, %v3609_v12  ;;  %v3731_v29 = vadd.f32 %v1414_v39, %v3609_v12  ;;  %v2535_v39 = vld [vmem:[%s4473_s2 + $0x6] sm:$0x3] }
 0x2c5   : > { %v2765_v35 = vpop.f32.mrf.mxu1  ;;  %v2799_v43 = vpop.f32.mrf.mxu0 }
 0x2c6   : > { %v3648_v41 = vadd.f32 %v2765_v35, %v3609_v12  ;;  %v3656_v47 = vadd.f32 %v2799_v43, %v3609_v12  ;;  %v2529_v35 = vld [vmem:[%s4473_s2 + $0xc] sm:$0x3]  ;;  %v625_v43 = vpop.permute.xlu1 %624 }
 0x2c7   : > { %v1104_v40 = vpop.f32.mrf.mxu1  ;;  %v1427_v49 = vpop.f32.mrf.mxu0 }
 0x2c8   : > { %1143 = vmax.xlane.f32.xlu1 %v3642_v36  ;;  %1480 = vmax.xlane.f32.xlu0 %v3645_v37  ;;  %v3666_v52 = vadd.f32 %v1104_v40, %v3609_v12  ;;  %v3674_v58 = vadd.f32 %v1427_v49, %v3609_v12  ;;  %v2538_v40 = vld [vmem:[%s4473_s2 + $0xe] sm:$0x3] }
 0x2c9   : > { %v2766_v45 = vpop.f32.mrf.mxu1  ;;  %v2800_v51 = vpop.f32.mrf.mxu0 }
 0x2ca   : > { %v3661_v50 = vadd.f32 %v2766_v45, %v3609_v12  ;;  %v3669_v53 = vadd.f32 %v2800_v51, %v3609_v12  ;;  %v665_v45 = vadd.f32 %v3570_v28, %v625_v43 }
 0x2cb   : > { %v1107_v55 = vpop.f32.mrf.mxu1  ;;  %v1430_v56 = vpop.f32.mrf.mxu0 }
 0x2cc   : > { %1155 = vmax.xlane.f32.xlu1 %v3648_v41  ;;  %1145 = vmax.xlane.f32.xlu0 %v3653_v44  ;;  %v3677_v59 = vadd.f32 %v1107_v55, %v3609_v12  ;;  %v3685_v63 = vadd.f32 %v1430_v56, %v3609_v12  ;;  %v3754_v49 = vsel %vm252_vm3, %v665_v45, 0.0 }
 0x2cd   : > { %v2769_v57 = vpop.f32.mrf.mxu1  ;;  %v2803_v60 = vpop.f32.mrf.mxu0  ;;  %v776_v51 = vmul.f32 %v3754_v49, %v3754_v49 }
 0x2ce   : > { %v3680_v61 = vadd.f32 %v2769_v57, %v3609_v12  ;;  %v3688_v2 = vadd.f32 %v2803_v60, %v3609_v12 }
 0x2cf   : > { %v1120_v62 = vpop.f32.mrf.mxu1  ;;  %v1443_v1 = vpop.f32.mrf.mxu0  ;;  %v777_v55 = vsel %vm415_vm4, %v776_v51, 0.0 }
 0x2d0   : > { %1157 = vmax.xlane.f32.xlu0 %v3661_v50  ;;  %1486 = vmax.xlane.f32.xlu1 %v3656_v47  ;;  %v3698_v5 = vadd.f32 %v1120_v62, %v3609_v12  ;;  %v3709_v13 = vadd.f32 %v1443_v1, %v3609_v12 }
 0x2d1   : > { %v2770_v3 = vpop.f32.mrf.mxu1  ;;  %v2804_v6 = vpop.f32.mrf.mxu0 }
 0x2d2   : > { %v3693_v4 = vadd.f32 %v2770_v3, %v3609_v12  ;;  %v3701_v7 = vadd.f32 %v2804_v6, %v3609_v12 }
 0x2d3   : > { %v1123_v8 = vpop.f32.mrf.mxu1  ;;  %v1446_v9 = vpop.f32.mrf.mxu0 }
 0x2d4   : > { %1151 = vmax.xlane.f32.xlu1 %v3666_v52  ;;  %1488 = vmax.xlane.f32.xlu0 %v3669_v53  ;;  %v3706_v11 = vadd.f32 %v1123_v8, %v3609_v12  ;;  %v3717_v20 = vadd.f32 %v1446_v9, %v3609_v12 }
 0x2d5   : > { %v2807_v10 = vpop.f32.mrf.mxu0 }
 0x2d6   : > { %v3712_v16 = vadd.f32 %v2807_v10, %v3609_v12 }
 0x2d7   : > { %v1459_v17 = vpop.f32.mrf.mxu0 }
 0x2d8   : > { %1153 = vmax.xlane.f32.xlu0 %v3677_v59  ;;  %1482 = vmax.xlane.f32.xlu1 %v3674_v58  ;;  %v3734_v31 = vadd.f32 %v1459_v17, %v3609_v12 }
 0x2d9   : > { %v2808_v21 = vpop.f32.mrf.mxu0 }
 0x2da   : > { %v3726_v25 = vadd.f32 %v2808_v21, %v3609_v12 }
 0x2db   : > { %v1462_v32 = vpop.f32.mrf.mxu0 }
 0x2dc   : > { %1484 = vmax.xlane.f32.xlu0 %v3685_v63  ;;  %1163 = vmax.xlane.f32.xlu1 %v3680_v61  ;;  %v3739_v26 = vadd.f32 %v1462_v32, %v3609_v12 }
 0x2e0   : > { %1165 = vmax.xlane.f32.xlu0 %v3693_v4  ;;  %1494 = vmax.xlane.f32.xlu1 %v3688_v2 }
 0x2e4   : > { %1496 = vmax.xlane.f32.xlu0 %v3701_v7  ;;  %1159 = vmax.xlane.f32.xlu1 %v3698_v5 }
 0x2e8   : > { %1161 = vmax.xlane.f32.xlu0 %v3706_v11  ;;  %1490 = vmax.xlane.f32.xlu1 %v3709_v13 }
 0x2ec   : > { %1492 = vmax.xlane.f32.xlu0 %v3717_v20  ;;  %1502 = vmax.xlane.f32.xlu1 %v3712_v16 }
 0x2f0   : > { %1504 = vmax.xlane.f32.xlu0 %v3726_v25  ;;  %1474 = vmax.xlane.f32.xlu1 %v3723_v22 }
 0x2f4   : > { %1476 = vmax.xlane.f32.xlu0 %v3731_v29  ;;  %1498 = vmax.xlane.f32.xlu1 %v3734_v31 }
 0x2f8   : > { %1500 = vmax.xlane.f32.xlu0 %v3739_v26 }
 0x305   : > { %676 = vperm.xlu1 %2975, %v2529_v35  }
 0x30e   : > { %806 = vperm.xlu0 %2974, %v2535_v39  }
 0x312   : > { %858 = vperm.xlu0 %2974, %v2538_v40  }
 0x329   : > { %778 = vadd.xlane.f32.xlu1 %v777_v55 }
 0x341   : > { %v3759_v56 = vpop.xlane.xlu1 %1139 }
 0x345   : > { %v3761_v57 = vpop.xlane.xlu1 %1135  ;;  %v3763_v60 = vpop.xlane.xlu0 %1141 }
 0x349   : > { %v3765_v62 = vpop.xlane.xlu1 %1147  ;;  %v3767_v1 = vpop.xlane.xlu0 %1137 }
 0x34d   : > { %v3769_v28 = vpop.xlane.xlu0 %1149  ;;  %v3771_v3 = vpop.xlane.xlu1 %1478 }
 0x351   : > { %v3773_v6 = vpop.xlane.xlu1 %1143  ;;  %v3775_v8 = vpop.xlane.xlu0 %1480 }
 0x355   : > { %v1156_v9 = vpop.xlane.xlu1 %1155  ;;  %v3777_v10 = vpop.xlane.xlu0 %1145 }
 0x356   : > { %v1177_v17 = vsub.f32 %v3648_v41, %v1156_v9 }
 0x358   : > { %v1203_v21 = vmul.f32 1.442695, %v1177_v17 }
 0x359   : > { %v1158_v32 = vpop.xlane.xlu0 %1157  ;;  %v3780_v35 = vpop.xlane.xlu1 %1486 }
 0x35a   : > { %2984 = vpow2.f32 %v1203_v21 }
 0x35d   : > { %v1152_v39 = vpop.xlane.xlu1 %1151  ;;  %v3782_v40 = vpop.xlane.xlu0 %1488 }
 0x35e   : > { %v1175_v43 = vsub.f32 %v3666_v52, %v1152_v39 }
 0x360   : > { %v1199_v45 = vmul.f32 1.442695, %v1175_v43 }
 0x361   : > { %v3785_v51 = vpop.xlane.xlu0 %1153  ;;  %v3787_v55 = vpop.xlane.xlu1 %1482 }
 0x362   : > { %2986 = vpow2.f32 %v1199_v45 }
 0x365   : > { %v3789_v0 = vpop.xlane.xlu0 %1484  ;;  %v1164_v46 = vpop.xlane.xlu1 %1163 }
 0x366   : > { %v1181_v41 = vsub.f32 %v3680_v61, %v1164_v46 }
 0x367   : > { %v3792_v9 = vpop.eup %2984 }
 0x368   : > { %4493 = vst [vmem:[#allocation15_spill] sm:$0xff] %v3792_v9  ;;  %v1211_v17 = vmul.f32 1.442695, %v1181_v41  ;;  %1235 = vadd.xlane.f32.xlu1 %v3792_v9 }
 0x369   : > { %v1166_v21 = vpop.xlane.xlu0 %1165  ;;  %v1495_v48 = vpop.xlane.xlu1 %1494 }
 0x36a   : > { %v1516_v52 = vsub.f32 %v3688_v2, %v1495_v48  ;;  %2988 = vpow2.f32 %v1211_v17 }
 0x36c   : > { %v1542_v39 = vmul.f32 1.442695, %v1516_v52 }
 0x36d   : > { %v1497_v43 = vpop.xlane.xlu0 %1496  ;;  %v1160_v12 = vpop.xlane.xlu1 %1159 }
 0x36e   : > { %v1179_v45 = vsub.f32 %v3698_v5, %v1160_v12  ;;  %2990 = vpow2.f32 %v1542_v39 }
 0x36f   : > { %v3797_v33 = vpop.eup %2986 }
 0x370   : > { %4494 = vst [vmem:[#allocation16_spill] sm:$0xff] %v3797_v33  ;;  %v1207_v34 = vmul.f32 1.442695, %v1179_v45  ;;  %1231 = vadd.xlane.f32.xlu1 %v3797_v33 }
 0x371   : > { %v1162_v46 = vpop.xlane.xlu0 %1161  ;;  %v1491_v61 = vpop.xlane.xlu1 %1490 }
 0x372   : > { %2992 = vpow2.f32 %v1207_v34  ;;  %v1178_v34 = vsub.f32 %v3661_v50, %v1158_v32 }
 0x375   : > { %v3800_v41 = vpop.xlane.xlu0 %1492  ;;  %v1503_v9 = vpop.xlane.xlu1 %1502 }
 0x376   : > { %v1520_v48 = vsub.f32 %v3712_v16, %v1503_v9  ;;  %v1514_v16 = vsub.f32 %v3709_v13, %v1491_v61  ;;  %v1517_v13 = vsub.f32 %v3701_v7, %v1497_v43  ;;  %v1512_v61 = vsub.f32 %v3656_v47, %v3780_v35 }
 0x377   : > { %v3803_v2 = vpop.eup %2988  ;;  %v1171_v7 = vsub.f32 %v3642_v36, %v3773_v6  ;;  %v1176_v6 = vsub.f32 %v3677_v59, %v3785_v51 }
 0x378   : > { %4495 = vst [vmem:[#allocation17_spill] sm:$0xff] %v3803_v2  ;;  %v1550_v17 = vmul.f32 1.442695, %v1520_v48  ;;  %1243 = vadd.xlane.f32.xlu1 %v3803_v2  ;;  %v1205_v2 = vmul.f32 1.442695, %v1178_v34 }
 0x379   : > { %v1505_v12 = vpop.xlane.xlu0 %1504  ;;  %v3806_v5 = vpop.xlane.xlu1 %1474  ;;  %v1538_v54 = vmul.f32 1.442695, %v1514_v16 }
 0x37a   : > { %2994 = vpow2.f32 %v1550_v17  ;;  %v1182_v17 = vsub.f32 %v3693_v4, %v1166_v21  ;;  %v1544_v21 = vmul.f32 1.442695, %v1517_v13  ;;  %v1521_v43 = vsub.f32 %v3726_v25, %v1505_v12 }
 0x37b   : > { %v3808_v52 = vpop.eup %2990  ;;  %v1169_v25 = vsub.f32 %v3612_v14, %v3759_v56  ;;  %v1515_v56 = vsub.f32 %v3717_v20, %v3800_v41  ;;  %v1506_v13 = vsub.f32 %v3723_v22, %v3806_v5  ;;  %v1172_v22 = vsub.f32 %v3653_v44, %v3777_v10 }
 0x37c   : > { %4496 = vst [vmem:[#allocation18_spill] sm:$0xff] %v3808_v52  ;;  %1574 = vadd.xlane.f32.xlu1 %v3808_v52  ;;  %v1173_v52 = vsub.f32 %v3627_v24, %v3765_v62  ;;  %v1180_v24 = vsub.f32 %v3706_v11, %v1162_v46  ;;  %v1534_v62 = vmul.f32 1.442695, %v1512_v61  ;;  %v1552_v46 = vmul.f32 1.442695, %v1521_v43 }
 0x37d   : > { %v1499_v39 = vpop.xlane.xlu1 %1498  ;;  %v3814_v9 = vpop.xlane.xlu0 %1476  ;;  %v1187_v51 = vmul.f32 1.442695, %v1169_v25  ;;  %v1170_v10 = vsub.f32 %v3619_v19, %v3763_v60 }
 0x37e   : > { %v1518_v45 = vsub.f32 %v3734_v31, %v1499_v39  ;;  %v1213_v31 = vmul.f32 1.442695, %v1182_v17  ;;  %v1195_v32 = vmul.f32 1.442695, %v1173_v52  ;;  %v1209_v35 = vmul.f32 1.442695, %v1180_v24 }
 0x37f   : > { %v3816_v48 = vpop.eup %2992  ;;  %v1507_v25 = vsub.f32 %v3731_v29, %v3814_v9 }
 0x380   : > { %v1546_v33 = vmul.f32 1.442695, %v1518_v45  ;;  %1239 = vadd.xlane.f32.xlu1 %v3816_v48  ;;  %v1508_v45 = vsub.f32 %v3632_v27, %v3771_v3  ;;  %v1174_v3 = vsub.f32 %v3637_v30, %v3769_v28  ;;  %v1522_v28 = vmul.f32 1.442695, %v1506_v13 }
 0x381   : > { %v1501_v50 = vpop.xlane.xlu0 %1500  ;;  %v677_v24 = vpop.permute.xlu1 %676 }
 0x382   : > { %2996 = vpow2.f32 %v1546_v33  ;;  %v1519_v34 = vsub.f32 %v3739_v26, %v1501_v50  ;;  %v1167_v26 = vsub.f32 %v3616_v18, %v3761_v57  ;;  %v1526_v50 = vmul.f32 1.442695, %v1508_v45 }
 0x383   : > { %2998 = vpow2.f32 %v1205_v2  ;;  %v1191_v2 = vmul.f32 1.442695, %v1171_v7  ;;  %v1197_v57 = vmul.f32 1.442695, %v1174_v3  ;;  %v717_v44 = vadd.f32 %v3577_v38, %v677_v24 }
 0x384   : > { %3000 = vpow2.f32 %v1538_v54  ;;  %v1548_v16 = vmul.f32 1.442695, %v1519_v34  ;;  %v1183_v41 = vmul.f32 1.442695, %v1167_v26  ;;  %v1189_v38 = vmul.f32 1.442695, %v1170_v10 }
 0x385   : > { %3002 = vpow2.f32 %v1213_v31  ;;  %v1540_v31 = vmul.f32 1.442695, %v1515_v56  ;;  %v4497_v26 = vld [vmem:[#allocation13_spill] sm:$0xff] }
 0x386   : > { %3004 = vpow2.f32 %v1195_v32  ;;  %v1513_v32 = vsub.f32 %v3669_v53, %v3782_v40  ;;  %v1193_v40 = vmul.f32 1.442695, %v1172_v22 }
 0x387   : > { %v3825_v39 = vpop.eup %2994  ;;  %3006 = vpow2.f32 %v1544_v21  ;;  %v1511_v21 = vsub.f32 %v3685_v63, %v3789_v0  ;;  %v3919_v0 = vsel %vm252_vm3, %v717_v44, 0.0  ;;  %v1509_v63 = vsub.f32 %v3645_v37, %v3775_v8 }
 0x388   : > { %1582 = vadd.xlane.f32.xlu1 %v3825_v39  ;;  %3008 = vpow2.f32 %v1534_v62  ;;  %v1536_v5 = vmul.f32 1.442695, %v1513_v32 }
 0x389   : > { %v807_v4 = vpop.permute.xlu0 %806  ;;  %3010 = vpow2.f32 %v1209_v35  ;;  %v1532_v62 = vmul.f32 1.442695, %v1511_v21  ;;  %v1528_v37 = vmul.f32 1.442695, %v1509_v63 }
 0x38a   : > { %v847_v33 = vadd.f32 %v3579_v42, %v807_v4  ;;  %v1510_v42 = vsub.f32 %v3674_v58, %v3787_v55  ;;  %3012 = vpow2.f32 %v1191_v2  ;;  %v1201_v55 = vmul.f32 1.442695, %v1176_v6 }
 0x38b   : > { %3014 = vpow2.f32 %v1552_v46 }
 0x38c   : > { %v3834_v47 = vsel %vm252_vm3, %v847_v33, 0.0  ;;  %v1530_v12 = vmul.f32 1.442695, %v1510_v42  ;;  %v782_v42 = vmul.f32 %v3919_v0, %v3919_v0 }
 0x38d   : > { %v958_v54 = vmul.f32 %v3834_v47, %v3834_v47  ;;  %v859_v45 = vpop.permute.xlu0 %858 }
 0x38e   : > { %3016 = vpow2.f32 %v1530_v12  ;;  %v783_v6 = vsel %vm415_vm4, %v782_v42, 0.0 }
 0x38f   : > { %v959_v11 = vsel %vm415_vm4, %v958_v54, 0.0  ;;  %v3842_v36 = vpop.eup %2996  ;;  %3018 = vpow2.f32 %v1201_v55  ;;  %v1524_v55 = vmul.f32 1.442695, %v1507_v25 }
 0x390   : > { %960 = vadd.xlane.f32.xlu0 %v959_v11  ;;  %1578 = vadd.xlane.f32.xlu1 %v3842_v36  ;;  %v3847_v52 = vpop.eup %2998  ;;  %3020 = vpow2.f32 %v1187_v51  ;;  %v1168_v11 = vsub.f32 %v3624_v23, %v3767_v1 }
 0x391   : > { %v3851_v58 = vpop.eup %3000  ;;  %3022 = vpow2.f32 %v1548_v16  ;;  %v2514_v16 = vld [vmem:[%s4473_s2 + $0x10] sm:$0x3] }
 0x392   : > { %v3856_v59 = vpop.eup %3002  ;;  %3024 = vpow2.f32 %v1526_v50  ;;  %v1185_v46 = vmul.f32 1.442695, %v1168_v11  ;;  %v899_v50 = vadd.f32 %v4497_v26, %v859_v45 }
 0x393   : > { %v3860_v14 = vpop.eup %3004  ;;  %3026 = vpow2.f32 %v1540_v31 }
 0x394   : > { %1237 = vadd.xlane.f32.xlu0 %v3847_v52  ;;  %1570 = vadd.xlane.f32.xlu1 %v3851_v58  ;;  %v3866_v17 = vpop.eup %3006  ;;  %3028 = vpow2.f32 %v1183_v41 }
 0x395   : > { %v3870_v27 = vpop.eup %3008  ;;  %3030 = vpow2.f32 %v1197_v57  ;;  %v2523_v57 = vld [vmem:[%s4473_s2 + $0x12] sm:$0x3] }
 0x396   : > { %v3876_v20 = vpop.eup %3010  ;;  %3032 = vpow2.f32 %v1522_v28 }
 0x397   : > { %v3880_v18 = vpop.eup %3012  ;;  %3034 = vpow2.f32 %v1536_v5 }
 0x398   : > { %1245 = vadd.xlane.f32.xlu0 %v3856_v59  ;;  %1227 = vadd.xlane.f32.xlu1 %v3860_v14  ;;  %v3886_v30 = vpop.eup %3014  ;;  %3036 = vpow2.f32 %v1193_v40 }
 0x399   : > { %3038 = vpow2.f32 %v1532_v62 }
 0x39b   : > { %v3888_v61 = vpop.eup %3016 }
 0x39c   : > { %1576 = vadd.xlane.f32.xlu0 %v3866_v17  ;;  %1566 = vadd.xlane.f32.xlu1 %v3870_v27  ;;  %v3894_v4 = vpop.eup %3018 }
 0x39d   : > { %v3896_v53 = vpop.eup %3020 }
 0x39e   : > { %v3902_v33 = vpop.eup %3022 }
 0x39f   : > { %v3904_v7 = vpop.eup %3024 }
 0x3a0   : > { %1241 = vadd.xlane.f32.xlu0 %v3876_v20  ;;  %1223 = vadd.xlane.f32.xlu1 %v3880_v18  ;;  %v3911_v54 = vpop.eup %3026 }
 0x3a1   : > { %v3913_v35 = vpop.eup %3028 }
 0x3a2   : > { %v3923_v60 = vpop.eup %3030 }
 0x3a3   : > { %v3925_v2 = vpop.eup %3032 }
 0x3a4   : > { %1584 = vadd.xlane.f32.xlu0 %v3886_v30  ;;  %1562 = vadd.xlane.f32.xlu1 %v3888_v61  ;;  %v3933_v8 = vpop.eup %3034 }
 0x3a5   : > { %v3939_v12 = vpop.eup %3036 }
 0x3a6   : > { %v3942_v23 = vpop.eup %3038 }
 0x3a8   : > { %1233 = vadd.xlane.f32.xlu0 %v3894_v4  ;;  %1219 = vadd.xlane.f32.xlu1 %v3896_v53 }
 0x3ac   : > { %1580 = vadd.xlane.f32.xlu0 %v3902_v33  ;;  %1558 = vadd.xlane.f32.xlu1 %v3904_v7 }
 0x3b0   : > { %1572 = vadd.xlane.f32.xlu0 %v3911_v54  ;;  %1215 = vadd.xlane.f32.xlu1 %v3913_v35 }
 0x3b2   : > { %v779_v19 = vpop.xlane.xlu1 %778 }
 0x3b3   : > { %v780_v43 = vmax.f32 %v779_v19, 1e-24 }
 0x3b4   : > { %1229 = vadd.xlane.f32.xlu0 %v3923_v60  ;;  %1554 = vadd.xlane.f32.xlu1 %v3925_v2 }
 0x3b5   : > { %3040 = vrsqrt.f32 %v780_v43 }
 0x3b6   : > { %3042 = vpow2.f32 %v1189_v38 }
 0x3b7   : > { %3044 = vpow2.f32 %v1528_v37 }
 0x3b8   : > { %1568 = vadd.xlane.f32.xlu0 %v3933_v8  ;;  %784 = vadd.xlane.f32.xlu1 %v783_v6  ;;  %3046 = vpow2.f32 %v1185_v46 }
 0x3b9   : > { %3048 = vpow2.f32 %v1524_v55 }
 0x3bc   : > { %1225 = vadd.xlane.f32.xlu0 %v3939_v12 }
 0x3c0   : > { %1564 = vadd.xlane.f32.xlu0 %v3942_v23 }
 0x3c2   : > { %v3041_v1 = vpop.eup %3040 }
 0x3c3   : > { %v3945_v34 = vpop.eup %3042  ;;  %v788_v51 = vmul.f32 10.0, %v3041_v1 }
 0x3c4   : > { %1221 = vadd.xlane.f32.xlu0 %v3945_v34  ;;  %v3949_v9 = vpop.eup %3044 }
 0x3c5   : > { %v789_v29 = vmul.f32 %v788_v51, %v3754_v49  ;;  %v3956_v3 = vpop.eup %3046  ;;  %v3961_v49 = vsel %vm252_vm3, %v899_v50, 0.0 }
 0x3c6   : > { %v3963_v31 = vpop.eup %3048  ;;  %v964_v41 = vmul.f32 %v3961_v49, %v3961_v49 }
 0x3c7   : > { %v790_v56 = vpack.c.bf16 %v789_v29, %v789_v29 }
 0x3c8   : > { %1560 = vadd.xlane.f32.xlu0 %v3949_v9  ;;  %v965_v13 = vsel %vm415_vm4, %v964_v41, 0.0 }
 0x3c9   : > { %792 = vst [vmem:[#allocation2 + $0x2] sm:$0x1] %v790_v56  ;;  %366 = vperm.xlu1 %2975, %v2514_v16   ;;  %v4498_v56 = vld [vmem:[#allocation17_spill] sm:$0xff] }
 0x3cc   : > { %1217 = vadd.xlane.f32.xlu0 %v3956_v3 }
 0x3d0   : > { %1556 = vadd.xlane.f32.xlu0 %v3963_v31  ;;  %v2560_v32 = vld [vmem:[#allocation2 + $0x2] sm:$0x1] }
 0x3d4   : > { %966 = vadd.xlane.f32.xlu0 %v965_v13 }
 0x3ea   : > { %546 = vperm.xlu0 %2974, %v2523_v57  }
 0x3ec   : > { %1674 = vxpose.xlu1.c.b16.start.end [1/1] (short) %v2560_v32, 128  ;;  %v4499_v32 = vmov 0.0  }
 0x3f1   : > { %v1236_v15 = vpop.xlane.xlu1 %1235 }
 0x3f9   : > { %v1232_v28 = vpop.xlane.xlu1 %1231 }
 0x401   : > { %v1244_v22 = vpop.xlane.xlu1 %1243 }
 0x405   : > { %v1575_v5 = vpop.xlane.xlu1 %1574 }
 0x409   : > { %v1240_v40 = vpop.xlane.xlu1 %1239 }
 0x411   : > { %v1583_v21 = vpop.xlane.xlu1 %1582 }
 0x419   : > { %v961_v24 = vpop.xlane.xlu0 %960  ;;  %v1579_v10 = vpop.xlane.xlu1 %1578 }
 0x41a   : > { %v962_v44 = vmax.f32 %v961_v24, 1e-24 }
 0x41c   : > { %3050 = vrsqrt.f32 %v962_v44 }
 0x41d   : > { %v1238_v62 = vpop.xlane.xlu0 %1237  ;;  %v3972_v38 = vpop.xlane.xlu1 %1570  ;;  %3052 = vrcp.f32 %v1244_v22 }
 0x421   : > { %v1246_v63 = vpop.xlane.xlu0 %1245  ;;  %v1228_v19 = vpop.xlane.xlu1 %1227 }
 0x422   : > { %3054 = vrcp.f32 %v1246_v63 }
 0x423   : > { %3056 = vrcp.f32 %v1240_v40 }
 0x425   : > { %v1577_v43 = vpop.xlane.xlu0 %1576  ;;  %v3974_v42 = vpop.xlane.xlu1 %1566 }
 0x429   : > { %v3051_v11 = vpop.eup %3050  ;;  %v1242_v37 = vpop.xlane.xlu0 %1241 }
 0x42a   : > { %v970_v6 = vmul.f32 10.0, %v3051_v11  ;;  %3058 = vrcp.f32 %v1242_v37  ;;  %v3976_v46 = vpop.xlane.xlu1 %1223  ;;  %v3053_v55 = vpop.eup %3052 }
 0x42b   : > { %3060 = vrcp.f32 %v1583_v21  ;;  %v1277_v16 = vmul.f32 %v3053_v55, %v4498_v56  ;;  %v4500_v55 = vld [vmem:[#allocation15_spill] sm:$0xff] }
 0x42c   : > { %v971_v25 = vmul.f32 %v970_v6, %v3834_v47  ;;  %3062 = vrcp.f32 %v1238_v62 }
 0x42d   : > { %v1585_v1 = vpop.xlane.xlu0 %1584 }
 0x42e   : > { %v972_v51 = vpack.c.bf16 %v971_v25, %v971_v25  ;;  %3064 = vrcp.f32 %v1585_v1  ;;  %v3979_v45 = vpop.xlane.xlu1 %1562 }
 0x42f   : > { %v3055_v29 = vpop.eup %3054  ;;  %3066 = vrcp.f32 %v1236_v15 }
 0x430   : > { %974 = vst [vmem:[#allocation2 + $0x3] sm:$0x1] %v972_v51  ;;  %v1278_v26 = vmul.f32 %v3055_v29, %v3856_v59  ;;  %3068 = vrcp.f32 %v1579_v10  ;;  %v3057_v47 = vpop.eup %3056 }
 0x431   : > { %v1234_v50 = vpop.xlane.xlu0 %1233  ;;  %v1275_v59 = vmul.f32 %v3057_v47, %v3816_v48 }
 0x432   : > { %v3983_v41 = vpop.xlane.xlu1 %1219  ;;  %v1286_v13 = vpack.c.bf16 %v1278_v26, %v1277_v16  ;;  %3070 = vrcp.f32 %v1234_v50 }
 0x434   : > { %2772 = vmatpush3.bf16.xpose.msra.mxu1 %v1286_v13 }
 0x435   : > { %v1581_v57 = vpop.xlane.xlu0 %1580  ;;  %2773 = vmatprep.subr.bf16.mxu1 %v4499_v32 }
 0x436   : > { %3072 = vrcp.f32 %v1581_v57  ;;  %v3986_v22 = vpop.xlane.xlu1 %1558 }
 0x437   : > { %v3059_v15 = vpop.eup %3058  ;;  %v2569_v40 = vld [vmem:[#allocation2 + $0x3] sm:$0x1]  ;;  %3074 = vrcp.f32 %v1232_v28 }
 0x438   : > { %2014 = vxpose.xlu0.c.b16.start.end [1/1] (short) %v2569_v40, 128  ;;  %v1276_v21 = vmul.f32 %v3059_v15, %v3876_v20  ;;  %v3061_v24 = vpop.eup %3060  ;;  %3076 = vrcp.f32 %v1577_v43  ;;  %v4501_v40 = vld [vmem:[#allocation9_spill] sm:$0xff] }
 0x439   : > { %v1573_v44 = vpop.xlane.xlu0 %1572  ;;  %v3063_v10 = vpop.eup %3062  ;;  %3078 = vrcp.f32 %v1575_v5  ;;  %v1616_v37 = vmul.f32 %v3061_v24, %v3825_v39 }
 0x43a   : > { %v3990_v62 = vpop.xlane.xlu1 %1215  ;;  %v1285_v63 = vpack.c.bf16 %v1276_v21, %v1275_v59  ;;  %v1274_v43 = vmul.f32 %v3063_v10, %v3847_v52 }
 0x43b   : > { %v3065_v11 = vpop.eup %3064 }
 0x43c   : > { %2774 = vmatpush3.bf16.xpose.msra.mxu1 %v1285_v63  ;;  %v1617_v6 = vmul.f32 %v3065_v11, %v3886_v30  ;;  %v3067_v28 = vpop.eup %3066 }
 0x43d   : > { %v1230_v25 = vpop.xlane.xlu0 %1229  ;;  %2775 = vmatprep.subr.bf16.mxu1 %v4499_v32  ;;  %v1273_v1 = vmul.f32 %v3067_v28, %v4500_v55  ;;  %v3069_v5 = vpop.eup %3068 }
 0x43e   : > { %3080 = vrcp.f32 %v1230_v25  ;;  %v3995_v48 = vpop.xlane.xlu1 %1554  ;;  %v1625_v20 = vpack.c.bf16 %v1617_v6, %v1616_v37  ;;  %v1614_v26 = vmul.f32 %v3069_v5, %v3842_v36 }
 0x43f   : > { %3082 = vrcp.f32 %v1228_v19  ;;  %v3071_v39 = vpop.eup %3070  ;;  %v1284_v29 = vpack.c.bf16 %v1274_v43, %v1273_v1 }
 0x440   : > { %2810 = vmatpush3.bf16.xpose.msra.mxu0 %v1625_v20  ;;  %3084 = vrcp.f32 %v1573_v44  ;;  %v1272_v57 = vmul.f32 %v3071_v39, %v3894_v4  ;;  %v4503_v4 = vld [vmem:[#allocation18_spill] sm:$0xff] }
 0x441   : > { %v1569_v51 = vpop.xlane.xlu0 %1568  ;;  %2811 = vmatprep.subr.bf16.mxu0 %v4499_v32  ;;  %3086 = vrcp.f32 %v3972_v38  ;;  %v4502_v38 = vld [vmem:[#allocation16_spill] sm:$0xff] }
 0x442   : > { %v785_v30 = vpop.xlane.xlu1 %784 }
 0x443   : > { %v3073_v56 = vpop.eup %3072  ;;  %v786_v16 = vmax.f32 %v785_v30, 1e-24 }
 0x444   : > { %2776 = vmatpush3.bf16.xpose.msra.mxu1 %v1284_v29  ;;  %v1615_v52 = vmul.f32 %v3073_v56, %v3902_v33  ;;  %v3075_v19 = vpop.eup %3074 }
 0x445   : > { %3088 = vrsqrt.f32 %v786_v16  ;;  %v1226_v50 = vpop.xlane.xlu0 %1225  ;;  %2777 = vmatprep.subr.bf16.mxu1 %v4499_v32  ;;  %v3077_v15 = vpop.eup %3076  ;;  %v1271_v36 = vmul.f32 %v3075_v19, %v4502_v38 }
 0x446   : > { %3090 = vrcp.f32 %v1226_v50  ;;  %v367_v13 = vpop.permute.xlu1 %366  ;;  %v1624_v47 = vpack.c.bf16 %v1615_v52, %v1614_v26  ;;  %v3079_v21 = vpop.eup %3078  ;;  %v1613_v10 = vmul.f32 %v3077_v15, %v3866_v17 }
 0x447   : > { %v407_v59 = vadd.f32 %v4501_v40, %v367_v13  ;;  %3092 = vrcp.f32 %v3976_v46  ;;  %v1283_v44 = vpack.c.bf16 %v1272_v57, %v1271_v36  ;;  %v1612_v11 = vmul.f32 %v3079_v21, %v4503_v4 }
 0x448   : > { %2812 = vmatpush3.bf16.xpose.msra.mxu0 %v1624_v47  ;;  %3094 = vrcp.f32 %v1569_v51 }
 0x449   : > { %v434_v33 = vpack.c.bf16 %v407_v59, %v407_v59  ;;  %v1565_v24 = vpop.xlane.xlu0 %1564  ;;  %2813 = vmatprep.subr.bf16.mxu0 %v4499_v32  ;;  %3096 = vrcp.f32 %v3974_v42  ;;  %v1623_v6 = vpack.c.bf16 %v1613_v10, %v1612_v11  ;;  %v4504_v59 = vld [vmem:[#allocation10_spill] sm:$0xff] }
 0x44b   : > { %v3081_v63 = vpop.eup %3080  ;;  %435 = vst [vmem:[#allocation4] sm:$0x1] %v434_v33 }
 0x44c   : > { %2778 = vmatpush3.bf16.xpose.msra.mxu1 %v1283_v44  ;;  %v3083_v46 = vpop.eup %3082  ;;  %v1270_v28 = vmul.f32 %v3081_v63, %v3923_v60 }
 0x44d   : > { %v1222_v37 = vpop.xlane.xlu0 %1221  ;;  %2779 = vmatprep.subr.bf16.mxu1 %v4499_v32  ;;  %v3085_v25 = vpop.eup %3084  ;;  %v1269_v17 = vmul.f32 %v3083_v46, %v3860_v14 }
 0x44e   : > { %3098 = vrcp.f32 %v1222_v37  ;;  %v3087_v20 = vpop.eup %3086  ;;  %v1611_v1 = vmul.f32 %v3085_v25, %v3911_v54  ;;  %v1682_v21 = vpop.trf.xlu1 }
 0x44f   : > { %3100 = vrcp.f32 %v3983_v41  ;;  %v1282_v55 = vpack.c.bf16 %v1270_v28, %v1269_v17  ;;  %v1610_v60 = vmul.f32 %v3087_v20, %v3851_v58 }
 0x450   : > { %2814 = vmatpush3.bf16.xpose.msra.mxu0 %v1623_v6  ;;  %3102 = vrcp.f32 %v1565_v24 }
 0x451   : > { %v1561_v43 = vpop.xlane.xlu0 %1560  ;;  %2815 = vmatprep.subr.bf16.mxu0 %v4499_v32  ;;  %3104 = vrcp.f32 %v3979_v45  ;;  %v1622_v30 = vpack.c.bf16 %v1611_v1, %v1610_v60 }
 0x452   : > { %v3089_v42 = vpop.eup %3088  ;;  %v1683_v4 = vpop.trf.xlu1  ;;  %v1287_v28 = vld [vmem:[#allocation4] sm:$0x1] }
 0x453   : > { %v3091_v5 = vpop.eup %3090  ;;  %v793_v51 = vmul.f32 %v3089_v42, %v3919_v0 }
 0x454   : > { %2780 = vmatpush3.bf16.xpose.msra.mxu1 %v1282_v55  ;;  %v3093_v41 = vpop.eup %3092  ;;  %v1268_v29 = vmul.f32 %v3091_v5, %v3939_v12 }
 0x455   : > { %v794_v39 = vpack.c.bf16 %v793_v51, %v793_v51  ;;  %v1218_v14 = vpop.xlane.xlu0 %1217  ;;  %2781 = vmatprep.subr.bf16.mxu1 %v4499_v32  ;;  %v3095_v56 = vpop.eup %3094  ;;  %v1267_v54 = vmul.f32 %v3093_v41, %v3880_v18 }
 0x456   : > { %3106 = vrcp.f32 %v1218_v14  ;;  %v3097_v0 = vpop.eup %3096  ;;  %v1609_v16 = vmul.f32 %v3095_v56, %v3933_v8  ;;  %v1684_v25 = vpop.trf.xlu1 }
 0x457   : > { %796 = vst [vmem:[#allocation3 + $0x2] sm:$0x1] %v794_v39  ;;  %3108 = vrcp.f32 %v3990_v62  ;;  %v1281_v58 = vpack.c.bf16 %v1268_v29, %v1267_v54  ;;  %v1608_v12 = vmul.f32 %v3097_v0, %v3870_v27 }
 0x458   : > { %2816 = vmatpush3.bf16.xpose.msra.mxu0 %v1622_v30  ;;  %3110 = vrcp.f32 %v1561_v43 }
 0x459   : > { %v1557_v45 = vpop.xlane.xlu0 %1556  ;;  %2817 = vmatprep.subr.bf16.mxu0 %v4499_v32  ;;  %3112 = vrcp.f32 %v3986_v22  ;;  %v1621_v18 = vpack.c.bf16 %v1609_v16, %v1608_v12 }
 0x45a   : > { %v1685_v20 = vpop.trf.xlu1 }
 0x45b   : > { %v3099_v26 = vpop.eup %3098 }
 0x45c   : > { %2782 = vmatpush3.bf16.xpose.msra.mxu1 %v1281_v58  ;;  %v3101_v52 = vpop.eup %3100  ;;  %v1266_v50 = vmul.f32 %v3099_v26, %v3945_v34 }
 0x45d   : > { %v967_v19 = vpop.xlane.xlu0 %966  ;;  %2783 = vmatprep.subr.bf16.mxu1 %v4499_v32  ;;  %v3103_v13 = vpop.eup %3102  ;;  %v1265_v47 = vmul.f32 %v3101_v52, %v3896_v53 }
 0x45e   : > { %v968_v62 = vmax.f32 %v967_v19, 1e-24  ;;  %v3105_v8 = vpop.eup %3104  ;;  %v1607_v27 = vmul.f32 %v3103_v13, %v3942_v23  ;;  %v1673_v10 = vld [vmem:[#allocation3 + $0x2] sm:$0x1]  ;;  %v1686_v42 = vpop.trf.xlu1 }
 0x45f   : > { %v1280_v22 = vpack.c.bf16 %v1266_v50, %v1265_v47  ;;  %v1606_v15 = vmul.f32 %v3105_v8, %v3888_v61 }
 0x460   : > { %3114 = vrsqrt.f32 %v968_v62  ;;  %2818 = vmatpush3.bf16.xpose.msra.mxu0 %v1621_v18 }
 0x461   : > { %2819 = vmatprep.subr.bf16.mxu0 %v4499_v32  ;;  %3116 = vrcp.f32 %v1557_v45  ;;  %v1620_v53 = vpack.c.bf16 %v1607_v27, %v1606_v15 }
 0x462   : > { %3118 = vrcp.f32 %v3995_v48 }
 0x463   : > { %v3107_v57 = vpop.eup %3106 }
 0x464   : > { %2784 = vmatpush3.bf16.xpose.msra.mxu1 %v1280_v22  ;;  %v3109_v40 = vpop.eup %3108  ;;  %v1264_v36 = vmul.f32 %v3107_v57, %v3956_v3 }
 0x465   : > { %v547_v34 = vpop.permute.xlu0 %546  ;;  %2785 = vmatprep.subr.bf16.mxu1 %v4499_v32  ;;  %v3111_v33 = vpop.eup %3110  ;;  %v1263_v23 = vmul.f32 %v3109_v40, %v3913_v35 }
 0x466   : > { %v587_v38 = vadd.f32 %v4504_v59, %v547_v34  ;;  %v3113_v44 = vpop.eup %3112  ;;  %v1605_v48 = vmul.f32 %v3111_v33, %v3949_v9  ;;  %v4505_v59 = vld [vmem:[#allocation14_spill] sm:$0xff] }
 0x467   : > { %v1279_v61 = vpack.c.bf16 %v1264_v36, %v1263_v23  ;;  %v1604_v63 = vmul.f32 %v3113_v44, %v3904_v7  ;;  %v1715_v7 = vsel %vm1034_vm5, %v1673_v10, 0 }
 0x468   : > { %v615_v24 = vpack.c.bf16 %v587_v38, %v587_v38  ;;  %2820 = vmatpush3.bf16.xpose.msra.mxu0 %v1620_v53 }
 0x469   : > { %2821 = vmatprep.subr.bf16.mxu0 %v4499_v32  ;;  %v1619_v46 = vpack.c.bf16 %v1605_v48, %v1604_v63 }
 0x46a   : > { %617 = vst [vmem:[#allocation4 + $0x1] sm:$0x1] %v615_v24 }
 0x46c   : > { %2786 = vmatpush3.bf16.xpose.msra.mxu1 %v1279_v61 }
 0x46d   : > { %v3115_v11 = vpop.eup %3114  ;;  %2913 = vmatprep.subr.msk.bf16.mxu1 %vm1034_vm5, %v1673_v10 }
 0x46e   : > { %v975_v3 = vmul.f32 %v3115_v11, %v3961_v49  ;;  %v3117_v37 = vpop.eup %3116 }
 0x46f   : > { %v3119_v6 = vpop.eup %3118  ;;  %v1603_v9 = vmul.f32 %v3117_v37, %v3963_v31 }
 0x470   : > { %v976_v35 = vpack.c.bf16 %v975_v3, %v975_v3  ;;  %2822 = vmatpush3.bf16.xpose.msra.mxu0 %v1619_v46  ;;  %v1602_v17 = vmul.f32 %v3119_v6, %v3925_v2  ;;  %v1687_v2 = vpop.trf.xlu1 }
 0x471   : > { %2823 = vmatprep.subr.bf16.mxu0 %v4499_v32  ;;  %v1627_v31 = vld [vmem:[#allocation4 + $0x1] sm:$0x1] }
 0x472   : > { %978 = vst [vmem:[#allocation3 + $0x3] sm:$0x1] %v976_v35  ;;  %v1618_v49 = vpack.c.bf16 %v1603_v9, %v1602_v17 }
 0x473   : > { %2788 = vmatmul.mubr.bf16.vlgmr.msra.gmra.mxu1 %v1287_v28 }
 0x474   : > { %2830 = vmatpush3.bf16.msra.mxu1 %v1715_v7  ;;  %2831 = vmatprep.mubr.msk.bf16.mxu1 %vm1009_vm6, %v1682_v21  ;;  %v1688_v1 = vpop.trf.xlu1 }
 0x475   : > { %2847 = vmatprep.subr.bf16.mxu1 %v4499_v32 }
 0x478   : > { %2824 = vmatpush3.bf16.xpose.msra.mxu0 %v1618_v49  ;;  %v1689_v5 = vpop.trf.xlu1 }
 0x479   : > { %v2013_v43 = vld [vmem:[#allocation3 + $0x3] sm:$0x1] }
 0x47a   : > { %2914 = vmatprep.subr.msk.bf16.mxu0 %vm1034_vm5, %v2013_v43  ;;  %v2055_v55 = vsel %vm1034_vm5, %v2013_v43, 0 }
 0x47b   : > { %2832 = vmatmul.mubr.msk.bf16.vlgmr.msra.gmra.mxu1 %vm1009_vm6, %v1683_v4 }
 0x47c   : > { %2835 = vmatprep.mubr.msk.bf16.mxu1 %vm1009_vm6, %v1684_v25 }
 0x47f   : > { %2826 = vmatmul.mubr.bf16.vlgmr.msra.gmra.mxu0 %v1627_v31 }
 0x480   : > { %2868 = vmatpush3.bf16.msra.mxu0 %v2055_v55 }
 0x481   : > { %2885 = vmatprep.subr.bf16.mxu0 %v4499_v32 }
 0x483   : > { %2836 = vmatmul.mubr.msk.bf16.gmra.mxu1 %vm1009_vm6, %v1685_v20 }
 0x484   : > { %2839 = vmatprep.mubr.msk.bf16.mxu1 %vm1009_vm6, %v1686_v42 }
 0x48b   : > { %2840 = vmatmul.mubr.msk.bf16.gmra.mxu1 %vm1009_vm6, %v1687_v2 }
 0x48c   : > { %2843 = vmatprep.mubr.msk.bf16.mxu1 %vm1009_vm6, %v1688_v1 }
 0x493   : > { %2844 = vmatmul.mubr.msk.bf16.gmra.mxu1 %vm1009_vm6, %v1689_v5 }
 0x494   : > { %2863 = vmatprep.mubr.msk.bf16.mxu1 %vm3327_vm0, %v4499_v32 }
 0x49a   : > { %v2022_v51 = vpop.trf.xlu0 }
 0x49b   : > { %2869 = vmatprep.mubr.msk.bf16.mxu0 %vm1009_vm6, %v2022_v51 }
 0x49e   : > { %v2023_v60 = vpop.trf.xlu0 }
 0x49f   : > { %2870 = vmatmul.mubr.msk.bf16.vlgmr.msra.gmra.mxu0 %vm1009_vm6, %v2023_v60 }
 0x4a2   : > { %v2024_v41 = vpop.trf.xlu0 }
 0x4a3   : > { %2873 = vmatprep.mubr.msk.bf16.mxu0 %vm1009_vm6, %v2024_v41 }
 0x4a6   : > { %v2025_v39 = vpop.trf.xlu0 }
 0x4a7   : > { %2874 = vmatmul.mubr.msk.bf16.gmra.mxu0 %vm1009_vm6, %v2025_v39 }
 0x4aa   : > { %v2026_v14 = vpop.trf.xlu0 }
 0x4ab   : > { %2877 = vmatprep.mubr.msk.bf16.mxu0 %vm1009_vm6, %v2026_v14 }
 0x4ae   : > { %v2027_v30 = vpop.trf.xlu0 }
 0x4af   : > { %2878 = vmatmul.mubr.msk.bf16.gmra.mxu0 %vm1009_vm6, %v2027_v30 }
 0x4b2   : > { %v2028_v29 = vpop.trf.xlu0 }
 0x4b3   : > { %2881 = vmatprep.mubr.msk.bf16.mxu0 %vm1009_vm6, %v2028_v29 }
 0x4b6   : > { %v2029_v56 = vpop.trf.xlu0 }
 0x4b7   : > { %2882 = vmatmul.mubr.msk.bf16.gmra.mxu0 %vm1009_vm6, %v2029_v56 }
 0x4b8   : > { %2901 = vmatprep.mubr.msk.bf16.mxu0 %vm3327_vm0, %v4499_v32 }
 0x533   : > { %v1322_v54 = vpop.f32.mrf.mxu1 }
 0x534   : > { %1328 = vst [vmem:[#allocation5] sm:$0x3] %v1322_v54 }
 0x535   : > { %v2789_v0 = vpop.f32.mrf.mxu1 }
 0x537   : > { %v1325_v45 = vpop.f32.mrf.mxu1 }
 0x539   : > { %v2790_v58 = vpop.f32.mrf.mxu1 }
 0x53b   : > { %v4073_v16 = vpop.f32.mrf.mxu1 }
 0x53c   : > { %v4186_v0 = vadd.f32 %v4073_v16, %v4505_v59 }
 0x53d   : > { %v4075_v26 = vpop.f32.mrf.mxu1 }
 0x53e   : > { %v4205_v16 = vadd.f32 %v4075_v26, %v4505_v59 }
 0x53f   : > { %v1662_v12 = vpop.f32.mrf.mxu0  ;;  %v4077_v52 = vpop.f32.mrf.mxu1 }
 0x540   : > { %1668 = vst [vmem:[#allocation5 + $0x2] sm:$0x3] %v1662_v12  ;;  %v4195_v58 = vadd.f32 %v4077_v52, %v4505_v59 }
 0x541   : > { %v2827_v19 = vpop.f32.mrf.mxu0  ;;  %v4079_v62 = vpop.f32.mrf.mxu1 }
 0x542   : > { %v4215_v52 = vadd.f32 %v4079_v62, %v4505_v59 }
 0x543   : > { %v1665_v18 = vpop.f32.mrf.mxu0  ;;  %v2837_v50 = vpop.f32.mrf.mxu1 }
 0x544   : > { %v4151_v60 = vadd.f32 %v2837_v50, %v4505_v59 }
 0x545   : > { %v2828_v13 = vpop.f32.mrf.mxu0  ;;  %v4081_v47 = vpop.f32.mrf.mxu1 }
 0x546   : > { %v4168_v30 = vadd.f32 %v4081_v47, %v4505_v59 }
 0x547   : > { %v2838_v8 = vpop.f32.mrf.mxu1 }
 0x548   : > { %v4159_v39 = vadd.f32 %v2838_v8, %v4505_v59 }
 0x549   : > { %v4083_v22 = vpop.f32.mrf.mxu1 }
 0x54a   : > { %v4177_v56 = vadd.f32 %v4083_v22, %v4505_v59 }
 0x54b   : > { %v2841_v27 = vpop.f32.mrf.mxu1 }
 0x54c   : > { %v1792_v43 = vadd.f32 %v2841_v27, %v4505_v59 }
 0x54d   : > { %v1783_v57 = vpop.f32.mrf.mxu1 }
 0x54e   : > { %v4135_v2 = vadd.f32 %v1783_v57, %v4505_v59 }
 0x54f   : > { %v2842_v15 = vpop.f32.mrf.mxu1 }
 0x550   : > { %v4127_v42 = vadd.f32 %v2842_v15, %v4505_v59 }
 0x551   : > { %v1786_v40 = vpop.f32.mrf.mxu1 }
 0x552   : > { %v4143_v5 = vadd.f32 %v1786_v40, %v4505_v59 }
 0x553   : > { %v2845_v34 = vpop.f32.mrf.mxu1 }
 0x554   : > { %v4086_v38 = vadd.f32 %v2845_v34, %v4505_v59 }
 0x555   : > { %v1799_v53 = vpop.f32.mrf.mxu1 }
 0x556   : > { %1842 = vmax.xlane.f32.xlu1 %v4086_v38  ;;  %v4106_v9 = vadd.f32 %v1799_v53, %v4505_v59 }
 0x557   : > { %v2846_v36 = vpop.f32.mrf.mxu1 }
 0x558   : > { %v4090_v21 = vadd.f32 %v2846_v36, %v4505_v59 }
 0x559   : > { %v1802_v7 = vpop.f32.mrf.mxu1 }
 0x55a   : > { %1844 = vmax.xlane.f32.xlu0 %v4090_v21  ;;  %v4114_v17 = vadd.f32 %v1802_v7, %v4505_v59 }
 0x55f   : > { %v4093_v33 = vpop.f32.mrf.mxu0 }
 0x560   : > { %v4199_v12 = vadd.f32 %v4093_v33, %v4505_v59 }
 0x561   : > { %v4095_v24 = vpop.f32.mrf.mxu0 }
 0x562   : > { %v4219_v18 = vadd.f32 %v4095_v24, %v4505_v59 }
 0x563   : > { %v4097_v23 = vpop.f32.mrf.mxu0 }
 0x564   : > { %v4209_v19 = vadd.f32 %v4097_v23, %v4505_v59 }
 0x565   : > { %v4099_v44 = vpop.f32.mrf.mxu0 }
 0x566   : > { %v4225_v26 = vadd.f32 %v4099_v44, %v4505_v59 }
 0x567   : > { %v2875_v61 = vpop.f32.mrf.mxu0 }
 0x568   : > { %v4162_v14 = vadd.f32 %v2875_v61, %v4505_v59 }
 0x569   : > { %v2107_v48 = vpop.f32.mrf.mxu0 }
 0x56a   : > { %v4180_v54 = vadd.f32 %v2107_v48, %v4505_v59 }
 0x56b   : > { %v2876_v10 = vpop.f32.mrf.mxu0 }
 0x56c   : > { %v4171_v29 = vadd.f32 %v2876_v10, %v4505_v59 }
 0x56d   : > { %v2110_v63 = vpop.f32.mrf.mxu0 }
 0x56e   : > { %v4189_v45 = vadd.f32 %v2110_v63, %v4505_v59 }
 0x56f   : > { %v2879_v4 = vpop.f32.mrf.mxu0 }
 0x570   : > { %v4130_v55 = vadd.f32 %v2879_v4, %v4505_v59 }
 0x571   : > { %v2123_v11 = vpop.f32.mrf.mxu0 }
 0x572   : > { %v4146_v51 = vadd.f32 %v2123_v11, %v4505_v59 }
 0x573   : > { %v2880_v3 = vpop.f32.mrf.mxu0 }
 0x574   : > { %v4138_v1 = vadd.f32 %v2880_v3, %v4505_v59 }
 0x575   : > { %v2126_v46 = vpop.f32.mrf.mxu0 }
 0x576   : > { %v4154_v41 = vadd.f32 %v2126_v46, %v4505_v59 }
 0x577   : > { %v2883_v37 = vpop.f32.mrf.mxu0 }
 0x578   : > { %v4102_v35 = vadd.f32 %v2883_v37, %v4505_v59 }
 0x579   : > { %v2139_v6 = vpop.f32.mrf.mxu0 }
 0x57a   : > { %2182 = vmax.xlane.f32.xlu1 %v4102_v35  ;;  %v4117_v49 = vadd.f32 %v2139_v6, %v4505_v59 }
 0x57b   : > { %v2884_v28 = vpop.f32.mrf.mxu0 }
 0x57c   : > { %v4109_v25 = vadd.f32 %v2884_v28, %v4505_v59 }
 0x57d   : > { %v2142_v20 = vpop.f32.mrf.mxu0 }
 0x57e   : > { %2184 = vmax.xlane.f32.xlu0 %v4109_v25  ;;  %1838 = vmax.xlane.f32.xlu1 %v4106_v9  ;;  %v4123_v31 = vadd.f32 %v2142_v20, %v4505_v59 }
 0x582   : > { %1840 = vmax.xlane.f32.xlu0 %v4114_v17  ;;  %2178 = vmax.xlane.f32.xlu1 %v4117_v49 }
 0x586   : > { %2180 = vmax.xlane.f32.xlu0 %v4123_v31  ;;  %1834 = vmax.xlane.f32.xlu1 %v1792_v43 }
 0x58a   : > { %1836 = vmax.xlane.f32.xlu0 %v4127_v42  ;;  %2174 = vmax.xlane.f32.xlu1 %v4130_v55 }
 0x58e   : > { %2176 = vmax.xlane.f32.xlu0 %v4138_v1  ;;  %1830 = vmax.xlane.f32.xlu1 %v4135_v2 }
 0x592   : > { %1832 = vmax.xlane.f32.xlu0 %v4143_v5  ;;  %2170 = vmax.xlane.f32.xlu1 %v4146_v51 }
 0x596   : > { %2172 = vmax.xlane.f32.xlu0 %v4154_v41  ;;  %1826 = vmax.xlane.f32.xlu1 %v4151_v60 }
 0x59a   : > { %1828 = vmax.xlane.f32.xlu0 %v4159_v39  ;;  %2166 = vmax.xlane.f32.xlu1 %v4162_v14 }
 0x59e   : > { %2168 = vmax.xlane.f32.xlu0 %v4171_v29  ;;  %1822 = vmax.xlane.f32.xlu1 %v4168_v30 }
 0x5a2   : > { %1824 = vmax.xlane.f32.xlu0 %v4177_v56  ;;  %2162 = vmax.xlane.f32.xlu1 %v4180_v54 }
 0x5a6   : > { %2164 = vmax.xlane.f32.xlu0 %v4189_v45  ;;  %1818 = vmax.xlane.f32.xlu1 %v4186_v0 }
 0x5aa   : > { %1820 = vmax.xlane.f32.xlu0 %v4195_v58  ;;  %2158 = vmax.xlane.f32.xlu1 %v4199_v12 }
 0x5ae   : > { %2160 = vmax.xlane.f32.xlu0 %v4209_v19  ;;  %1814 = vmax.xlane.f32.xlu1 %v4205_v16 }
 0x5b2   : > { %1816 = vmax.xlane.f32.xlu0 %v4215_v52  ;;  %2154 = vmax.xlane.f32.xlu1 %v4219_v18 }
 0x5b6   : > { %2156 = vmax.xlane.f32.xlu0 %v4225_v26 }
 0x5df   : > { %v1843_v50 = vpop.xlane.xlu1 %1842 }
 0x5e0   : > { %v1860_v34 = vsub.f32 %v4086_v38, %v1843_v50 }
 0x5e2   : > { %v1890_v23 = vmul.f32 1.442695, %v1860_v34 }
 0x5e3   : > { %v1845_v13 = vpop.xlane.xlu0 %1844 }
 0x5e4   : > { %v1861_v59 = vsub.f32 %v4090_v21, %v1845_v13 }
 0x5e6   : > { %v1892_v63 = vmul.f32 1.442695, %v1861_v59 }
 0x603   : > { %v2183_v47 = vpop.xlane.xlu1 %2182 }
 0x604   : > { %v2200_v6 = vsub.f32 %v4102_v35, %v2183_v47 }
 0x607   : > { %v2185_v8 = vpop.xlane.xlu0 %2184  ;;  %v1839_v62 = vpop.xlane.xlu1 %1838 }
 0x608   : > { %v1858_v38 = vsub.f32 %v4106_v9, %v1839_v62  ;;  %v2201_v21 = vsub.f32 %v4109_v25, %v2185_v8 }
 0x60a   : > { %v1886_v28 = vmul.f32 1.442695, %v1858_v38 }
 0x60b   : > { %v1841_v22 = vpop.xlane.xlu0 %1840  ;;  %v2179_v27 = vpop.xlane.xlu1 %2178 }
 0x60c   : > { %v1859_v4 = vsub.f32 %v4114_v17, %v1841_v22  ;;  %v2198_v9 = vsub.f32 %v4117_v49, %v2179_v27 }
 0x60e   : > { %v1888_v37 = vmul.f32 1.442695, %v1859_v4  ;;  %v2226_v8 = vmul.f32 1.442695, %v2198_v9 }
 0x60f   : > { %v2181_v57 = vpop.xlane.xlu0 %2180  ;;  %v1835_v15 = vpop.xlane.xlu1 %1834 }
 0x610   : > { %v1856_v40 = vsub.f32 %v1792_v43, %v1835_v15  ;;  %v2232_v43 = vmul.f32 1.442695, %v2201_v21  ;;  %v2199_v35 = vsub.f32 %v4123_v31, %v2181_v57 }
 0x612   : > { %v1882_v53 = vmul.f32 1.442695, %v1856_v40  ;;  %v2228_v22 = vmul.f32 1.442695, %v2199_v35 }
 0x613   : > { %v1837_v36 = vpop.xlane.xlu0 %1836  ;;  %v2175_v33 = vpop.xlane.xlu1 %2174 }
 0x614   : > { %v1857_v24 = vsub.f32 %v4127_v42, %v1837_v36  ;;  %3120 = vpow2.f32 %v1882_v53  ;;  %v2196_v44 = vsub.f32 %v4130_v55, %v2175_v33  ;;  %v2230_v42 = vmul.f32 1.442695, %v2200_v6 }
 0x616   : > { %v1884_v61 = vmul.f32 1.442695, %v1857_v24  ;;  %v2222_v11 = vmul.f32 1.442695, %v2196_v44 }
 0x617   : > { %v2177_v48 = vpop.xlane.xlu0 %2176  ;;  %v1831_v10 = vpop.xlane.xlu1 %1830 }
 0x618   : > { %3122 = vpow2.f32 %v1884_v61  ;;  %v2197_v17 = vsub.f32 %v4138_v1, %v2177_v48  ;;  %v1854_v1 = vsub.f32 %v4135_v2, %v1831_v10 }
 0x619   : > { %3124 = vpow2.f32 %v1890_v23 }
 0x61a   : > { %3126 = vpow2.f32 %v1892_v63  ;;  %v2224_v13 = vmul.f32 1.442695, %v2197_v17  ;;  %v1878_v57 = vmul.f32 1.442695, %v1854_v1 }
 0x61b   : > { %v1833_v3 = vpop.xlane.xlu0 %1832  ;;  %v2171_v46 = vpop.xlane.xlu1 %2170  ;;  %3128 = vpow2.f32 %v2222_v11 }
 0x61c   : > { %3130 = vpow2.f32 %v1888_v37  ;;  %v1855_v27 = vsub.f32 %v4143_v5, %v1833_v3  ;;  %v2194_v40 = vsub.f32 %v4146_v51, %v2171_v46 }
 0x61d   : > { %3132 = vpow2.f32 %v1886_v28 }
 0x61e   : > { %3134 = vpow2.f32 %v2232_v43  ;;  %v1880_v53 = vmul.f32 1.442695, %v1855_v27  ;;  %v2218_v5 = vmul.f32 1.442695, %v2194_v40 }
 0x61f   : > { %v2173_v7 = vpop.xlane.xlu0 %2172  ;;  %v1827_v20 = vpop.xlane.xlu1 %1826  ;;  %3136 = vpow2.f32 %v2230_v42 }
 0x620   : > { %3138 = vpow2.f32 %v2224_v13  ;;  %v2195_v36 = vsub.f32 %v4154_v41, %v2173_v7  ;;  %v1852_v59 = vsub.f32 %v4151_v60, %v1827_v20 }
 0x621   : > { %v4238_v55 = vpop.eup %3120  ;;  %3140 = vpow2.f32 %v2226_v8 }
 0x622   : > { %1914 = vadd.xlane.f32.xlu1 %v4238_v55  ;;  %3142 = vpow2.f32 %v2228_v22  ;;  %v2220_v23 = vmul.f32 1.442695, %v2195_v36  ;;  %v1874_v41 = vmul.f32 1.442695, %v1852_v59 }
 0x623   : > { %v1829_v25 = vpop.xlane.xlu0 %1828  ;;  %v2167_v50 = vpop.xlane.xlu1 %2166  ;;  %3144 = vpow2.f32 %v1878_v57 }
 0x624   : > { %3146 = vpow2.f32 %v1880_v53  ;;  %v1853_v44 = vsub.f32 %v4159_v39, %v1829_v25  ;;  %v2192_v48 = vsub.f32 %v4162_v14, %v2167_v50 }
 0x625   : > { %v4242_v47 = vpop.eup %3122  ;;  %3148 = vpow2.f32 %v2218_v5 }
 0x626   : > { %v4245_v62 = vpop.eup %3124  ;;  %1916 = vadd.xlane.f32.xlu0 %v4242_v47  ;;  %3150 = vpow2.f32 %v2220_v23  ;;  %v1876_v60 = vmul.f32 1.442695, %v1853_v44  ;;  %v2214_v39 = vmul.f32 1.442695, %v2192_v48 }
 0x627   : > { %1922 = vadd.xlane.f32.xlu1 %v4245_v62  ;;  %v2169_v49 = vpop.xlane.xlu0 %2168  ;;  %v1823_v15 = vpop.xlane.xlu1 %1822  ;;  %3152 = vpow2.f32 %v1874_v41 }
 0x628   : > { %v4250_v31 = vpop.eup %3126  ;;  %v2193_v4 = vsub.f32 %v4171_v29, %v2169_v49  ;;  %v1850_v3 = vsub.f32 %v4168_v30, %v1823_v15  ;;  %3154 = vpow2.f32 %v1876_v60 }
 0x629   : > { %v4253_v34 = vpop.eup %3128  ;;  %3156 = vpow2.f32 %v2214_v39 }
 0x62a   : > { %1924 = vadd.xlane.f32.xlu0 %v4250_v31  ;;  %v4258_v33 = vpop.eup %3130  ;;  %v2216_v21 = vmul.f32 1.442695, %v2193_v4  ;;  %v1870_v29 = vmul.f32 1.442695, %v1850_v3 }
 0x62b   : > { %2254 = vadd.xlane.f32.xlu1 %v4253_v34  ;;  %v1825_v2 = vpop.xlane.xlu0 %1824  ;;  %v4261_v24 = vpop.eup %3132 }
 0x62c   : > { %v2163_v51 = vpop.xlane.xlu1 %2162  ;;  %v4266_v61 = vpop.eup %3134  ;;  %v1851_v37 = vsub.f32 %v4177_v56, %v1825_v2  ;;  %3158 = vpow2.f32 %v2216_v21  ;;  %v2352_v21 = vld [vmem:[%s4475_s4] sm:$0xff] }
 0x62d   : > { %v4269_v63 = vpop.eup %3136  ;;  %v2190_v28 = vsub.f32 %v4180_v54, %v2163_v51  ;;  %3160 = vpow2.f32 %v1870_v29 }
 0x62e   : > { %1920 = vadd.xlane.f32.xlu0 %v4258_v33  ;;  %v4274_v11 = vpop.eup %3138  ;;  %v1872_v20 = vmul.f32 1.442695, %v1851_v37  ;;  %v2541_v37 = vld [vmem:[%s4473_s2 + $0x16] sm:$0x3] }
 0x62f   : > { %1918 = vadd.xlane.f32.xlu1 %v4261_v24  ;;  %v2165_v10 = vpop.xlane.xlu0 %2164  ;;  %v4277_v46 = vpop.eup %3140  ;;  %v2210_v56 = vmul.f32 1.442695, %v2190_v28 }
 0x630   : > { %v1819_v38 = vpop.xlane.xlu1 %1818  ;;  %v4282_v6 = vpop.eup %3142  ;;  %v2191_v43 = vsub.f32 %v4189_v45, %v2165_v10  ;;  %3162 = vpow2.f32 %v1872_v20 }
 0x631   : > { %v4285_v7 = vpop.eup %3144  ;;  %v1848_v42 = vsub.f32 %v4186_v0, %v1819_v38  ;;  %3164 = vpow2.f32 %v2210_v56 }
 0x632   : > { %2264 = vadd.xlane.f32.xlu0 %v4266_v61  ;;  %v4290_v17 = vpop.eup %3146  ;;  %v2212_v54 = vmul.f32 1.442695, %v2191_v43 }
 0x633   : > { %2262 = vadd.xlane.f32.xlu1 %v4269_v63  ;;  %v1821_v14 = vpop.xlane.xlu0 %1820  ;;  %v4293_v25 = vpop.eup %3148  ;;  %v1866_v45 = vmul.f32 1.442695, %v1848_v42 }
 0x634   : > { %v2159_v30 = vpop.xlane.xlu1 %2158  ;;  %v1849_v50 = vsub.f32 %v4195_v58, %v1821_v14  ;;  %v4298_v13 = vpop.eup %3150  ;;  %3166 = vpow2.f32 %v2212_v54  ;;  %v2532_v14 = vld [vmem:[%s4473_s2 + $0x14] sm:$0x3] }
 0x635   : > { %v2188_v8 = vsub.f32 %v4199_v12, %v2159_v30  ;;  %v4301_v1 = vpop.eup %3152  ;;  %3168 = vpow2.f32 %v1866_v45 }
 0x636   : > { %2256 = vadd.xlane.f32.xlu0 %v4274_v11  ;;  %v1868_v49 = vmul.f32 1.442695, %v1849_v50  ;;  %v4306_v27 = vpop.eup %3154 }
 0x637   : > { %2258 = vadd.xlane.f32.xlu1 %v4277_v46  ;;  %v2161_v9 = vpop.xlane.xlu0 %2160  ;;  %v2206_v58 = vmul.f32 1.442695, %v2188_v8  ;;  %v4309_v57 = vpop.eup %3156 }
 0x638   : > { %v1815_v35 = vpop.xlane.xlu1 %1814  ;;  %v2189_v22 = vsub.f32 %v4209_v19, %v2161_v9  ;;  %3170 = vpow2.f32 %v1868_v49 }
 0x639   : > { %v1846_v15 = vsub.f32 %v4205_v16, %v1815_v35  ;;  %v4314_v53 = vpop.eup %3158  ;;  %3172 = vpow2.f32 %v2206_v58 }
 0x63a   : > { %2260 = vadd.xlane.f32.xlu0 %v4282_v6  ;;  %v2208_v40 = vmul.f32 1.442695, %v2189_v22  ;;  %v4317_v59 = vpop.eup %3160 }
 0x63b   : > { %1910 = vadd.xlane.f32.xlu1 %v4285_v7  ;;  %v1817_v0 = vpop.xlane.xlu0 %1816  ;;  %v1862_v19 = vmul.f32 1.442695, %v1846_v15 }
 0x63c   : > { %v2155_v12 = vpop.xlane.xlu1 %2154  ;;  %v1847_v2 = vsub.f32 %v4215_v52, %v1817_v0  ;;  %3174 = vpow2.f32 %v2208_v40 }
 0x63d   : > { %v2186_v36 = vsub.f32 %v4219_v18, %v2155_v12  ;;  %v4322_v23 = vpop.eup %3162  ;;  %3176 = vpow2.f32 %v1862_v19 }
 0x63e   : > { %1912 = vadd.xlane.f32.xlu0 %v4290_v17  ;;  %v1864_v16 = vmul.f32 1.442695, %v1847_v2  ;;  %v4324_v44 = vpop.eup %3164 }
 0x63f   : > { %2250 = vadd.xlane.f32.xlu1 %v4293_v25  ;;  %v2157_v5 = vpop.xlane.xlu0 %2156  ;;  %v2202_v52 = vmul.f32 1.442695, %v2186_v36 }
 0x640   : > { %v2187_v51 = vsub.f32 %v4225_v26, %v2157_v5  ;;  %3178 = vpow2.f32 %v1864_v16 }
 0x641   : > { %v4328_v41 = vpop.eup %3166  ;;  %3180 = vpow2.f32 %v2202_v52 }
 0x642   : > { %2252 = vadd.xlane.f32.xlu0 %v4298_v13  ;;  %v2204_v18 = vmul.f32 1.442695, %v2187_v51  ;;  %v4330_v48 = vpop.eup %3168 }
 0x643   : > { %1906 = vadd.xlane.f32.xlu1 %v4301_v1 }
 0x644   : > { %3182 = vpow2.f32 %v2204_v18 }
 0x645   : > { %v4334_v26 = vpop.eup %3170 }
 0x646   : > { %1908 = vadd.xlane.f32.xlu0 %v4306_v27  ;;  %v4336_v10 = vpop.eup %3172 }
 0x647   : > { %2246 = vadd.xlane.f32.xlu1 %v4309_v57 }
 0x649   : > { %v4340_v60 = vpop.eup %3174 }
 0x64a   : > { %2248 = vadd.xlane.f32.xlu0 %v4314_v53  ;;  %v4342_v4 = vpop.eup %3176 }
 0x64b   : > { %1902 = vadd.xlane.f32.xlu1 %v4317_v59 }
 0x64d   : > { %v4346_v38 = vpop.eup %3178 }
 0x64e   : > { %1904 = vadd.xlane.f32.xlu0 %v4322_v23  ;;  %v4348_v39 = vpop.eup %3180 }
 0x64f   : > { %2242 = vadd.xlane.f32.xlu1 %v4324_v44 }
 0x651   : > { %v4352_v3 = vpop.eup %3182 }
 0x652   : > { %2244 = vadd.xlane.f32.xlu0 %v4328_v41 }
 0x653   : > { %1898 = vadd.xlane.f32.xlu1 %v4330_v48 }
 0x656   : > { %1900 = vadd.xlane.f32.xlu0 %v4334_v26 }
 0x657   : > { %2238 = vadd.xlane.f32.xlu1 %v4336_v10 }
 0x65a   : > { %2240 = vadd.xlane.f32.xlu0 %v4340_v60 }
 0x65b   : > { %1894 = vadd.xlane.f32.xlu1 %v4342_v4 }
 0x65e   : > { %1896 = vadd.xlane.f32.xlu0 %v4346_v38 }
 0x65f   : > { %2234 = vadd.xlane.f32.xlu1 %v4348_v39 }
 0x662   : > { %2236 = vadd.xlane.f32.xlu0 %v4352_v3 }
 0x670   : > { %728 = vperm.xlu1 %2975, %v2532_v14  }
 0x674   : > { %2355 = vperm.xlu1 %2975, %v2352_v21  }
 0x678   : > { %910 = vperm.xlu0 %2974, %v2541_v37  }
 0x6ab   : > { %v1915_v29 = vpop.xlane.xlu1 %1914 }
 0x6af   : > { %v1917_v28 = vpop.xlane.xlu0 %1916 }
 0x6b0   : > { %v1923_v30 = vpop.xlane.xlu1 %1922 }
 0x6b1   : > { %3184 = vrcp.f32 %v1923_v30 }
 0x6b3   : > { %v1925_v20 = vpop.xlane.xlu0 %1924 }
 0x6b4   : > { %3186 = vrcp.f32 %v1925_v20  ;;  %v2255_v43 = vpop.xlane.xlu1 %2254 }
 0x6b7   : > { %v1921_v56 = vpop.xlane.xlu0 %1920 }
 0x6b8   : > { %3188 = vrcp.f32 %v1921_v56  ;;  %v1919_v42 = vpop.xlane.xlu1 %1918 }
 0x6b9   : > { %3190 = vrcp.f32 %v1919_v42 }
 0x6bb   : > { %v2265_v9 = vpop.xlane.xlu0 %2264 }
 0x6bc   : > { %3192 = vrcp.f32 %v2265_v9  ;;  %v2263_v54 = vpop.xlane.xlu1 %2262 }
 0x6bd   : > { %3194 = vrcp.f32 %v2263_v54 }
 0x6be   : > { %v3185_v50 = vpop.eup %3184  ;;  %3196 = vrcp.f32 %v1917_v28 }
 0x6bf   : > { %v2257_v35 = vpop.xlane.xlu0 %2256  ;;  %3198 = vrcp.f32 %v1915_v29  ;;  %v1956_v0 = vmul.f32 %v3185_v50, %v4245_v62 }
 0x6c0   : > { %v2259_v45 = vpop.xlane.xlu1 %2258 }
 0x6c1   : > { %v3187_v8 = vpop.eup %3186  ;;  %3200 = vrcp.f32 %v2259_v45 }
 0x6c2   : > { %v1957_v49 = vmul.f32 %v3187_v8, %v4250_v31 }
 0x6c3   : > { %v2261_v22 = vpop.xlane.xlu0 %2260 }
 0x6c4   : > { %3202 = vrcp.f32 %v2261_v22  ;;  %v1911_v58 = vpop.xlane.xlu1 %1910  ;;  %v1965_v15 = vpack.c.bf16 %v1957_v49, %v1956_v0 }
 0x6c5   : > { %v3189_v12 = vpop.eup %3188 }
 0x6c6   : > { %v3191_v40 = vpop.eup %3190  ;;  %2848 = vmatpush3.bf16.xpose.msra.mxu1 %v1965_v15  ;;  %v1955_v5 = vmul.f32 %v3189_v12, %v4258_v33 }
 0x6c7   : > { %v1913_v2 = vpop.xlane.xlu0 %1912  ;;  %2849 = vmatprep.subr.bf16.mxu1 %v4499_v32  ;;  %v1954_v36 = vmul.f32 %v3191_v40, %v4261_v24 }
 0x6c8   : > { %3204 = vrcp.f32 %v1913_v2  ;;  %v2251_v19 = vpop.xlane.xlu1 %2250 }
 0x6c9   : > { %v3193_v16 = vpop.eup %3192  ;;  %3206 = vrcp.f32 %v2257_v35  ;;  %v1964_v14 = vpack.c.bf16 %v1955_v5, %v1954_v36 }
 0x6ca   : > { %v3195_v62 = vpop.eup %3194  ;;  %3208 = vrcp.f32 %v1911_v58  ;;  %v2297_v31 = vmul.f32 %v3193_v16, %v4266_v61 }
 0x6cb   : > { %3210 = vrcp.f32 %v2255_v43  ;;  %v2253_v51 = vpop.xlane.xlu0 %2252  ;;  %v2296_v52 = vmul.f32 %v3195_v62, %v4269_v63  ;;  %v3197_v21 = vpop.eup %3196 }
 0x6cc   : > { %v1907_v18 = vpop.xlane.xlu1 %1906  ;;  %v3199_v29 = vpop.eup %3198  ;;  %v1953_v61 = vmul.f32 %v3197_v21, %v4242_v47 }
 0x6cd   : > { %v2305_v37 = vpack.c.bf16 %v2297_v31, %v2296_v52  ;;  %v1952_v63 = vmul.f32 %v3199_v29, %v4238_v55 }
 0x6ce   : > { %2850 = vmatpush3.bf16.xpose.msra.mxu1 %v1964_v14  ;;  %v3201_v28 = vpop.eup %3200 }
 0x6cf   : > { %2886 = vmatpush3.bf16.xpose.msra.mxu0 %v2305_v37  ;;  %v1909_v24 = vpop.xlane.xlu0 %1908  ;;  %2851 = vmatprep.subr.bf16.mxu1 %v4499_v32  ;;  %v2294_v20 = vmul.f32 %v3201_v28, %v4277_v46  ;;  %v1963_v9 = vpack.c.bf16 %v1953_v61, %v1952_v63 }
 0x6d0   : > { %3212 = vrcp.f32 %v1909_v24  ;;  %v2247_v33 = vpop.xlane.xlu1 %2246  ;;  %2887 = vmatprep.subr.bf16.mxu0 %v4499_v32 }
 0x6d1   : > { %v3203_v30 = vpop.eup %3202  ;;  %3214 = vrcp.f32 %v2253_v51 }
 0x6d2   : > { %3216 = vrcp.f32 %v1907_v18  ;;  %v2295_v43 = vmul.f32 %v3203_v30, %v4282_v6  ;;  %v4506_v30 = vld [vmem:[#allocation12_spill] sm:$0xff] }
 0x6d3   : > { %3218 = vrcp.f32 %v2251_v19  ;;  %v2249_v56 = vpop.xlane.xlu0 %2248 }
 0x6d4   : > { %v1903_v42 = vpop.xlane.xlu1 %1902  ;;  %v2304_v54 = vpack.c.bf16 %v2295_v43, %v2294_v20 }
 0x6d5   : > { %v3205_v50 = vpop.eup %3204 }
 0x6d6   : > { %v3207_v35 = vpop.eup %3206  ;;  %2852 = vmatpush3.bf16.xpose.msra.mxu1 %v1963_v9  ;;  %v1951_v46 = vmul.f32 %v3205_v50, %v4290_v17 }
 0x6d7   : > { %v3209_v45 = vpop.eup %3208  ;;  %2888 = vmatpush3.bf16.xpose.msra.mxu0 %v2304_v54  ;;  %v1905_v47 = vpop.xlane.xlu0 %1904  ;;  %2853 = vmatprep.subr.bf16.mxu1 %v4499_v32  ;;  %v2293_v6 = vmul.f32 %v3207_v35, %v4274_v11  ;;  %v4507_v35 = vld [vmem:[#allocation11_spill] sm:$0xff] }
 0x6d8   : > { %v3211_v8 = vpop.eup %3210  ;;  %3220 = vrcp.f32 %v1905_v47  ;;  %v2243_v55 = vpop.xlane.xlu1 %2242  ;;  %2889 = vmatprep.subr.bf16.mxu0 %v4499_v32  ;;  %v1950_v0 = vmul.f32 %v3209_v45, %v4285_v7 }
 0x6d9   : > { %3222 = vrcp.f32 %v2249_v56  ;;  %v2292_v22 = vmul.f32 %v3211_v8, %v4253_v34 }
 0x6da   : > { %3224 = vrcp.f32 %v1903_v42  ;;  %v1962_v15 = vpack.c.bf16 %v1951_v46, %v1950_v0 }
 0x6db   : > { %3226 = vrcp.f32 %v2247_v33  ;;  %v2245_v49 = vpop.xlane.xlu0 %2244  ;;  %v2303_v40 = vpack.c.bf16 %v2293_v6, %v2292_v22 }
 0x6dc   : > { %v1899_v58 = vpop.xlane.xlu1 %1898 }
 0x6dd   : > { %v3213_v12 = vpop.eup %3212 }
 0x6de   : > { %v3215_v2 = vpop.eup %3214  ;;  %2854 = vmatpush3.bf16.xpose.msra.mxu1 %v1962_v15  ;;  %v1949_v7 = vmul.f32 %v3213_v12, %v4306_v27 }
 0x6df   : > { %v3217_v19 = vpop.eup %3216  ;;  %2890 = vmatpush3.bf16.xpose.msra.mxu0 %v2303_v40  ;;  %v1901_v36 = vpop.xlane.xlu0 %1900  ;;  %2855 = vmatprep.subr.bf16.mxu1 %v4499_v32  ;;  %v2291_v34 = vmul.f32 %v3215_v2, %v4298_v13 }
 0x6e0   : > { %v3219_v17 = vpop.eup %3218  ;;  %3228 = vrcp.f32 %v1901_v36  ;;  %v2239_v11 = vpop.xlane.xlu1 %2238  ;;  %2891 = vmatprep.subr.bf16.mxu0 %v4499_v32  ;;  %v1948_v5 = vmul.f32 %v3217_v19, %v4301_v1 }
 0x6e1   : > { %3230 = vrcp.f32 %v2245_v49  ;;  %v2290_v62 = vmul.f32 %v3219_v17, %v4293_v25 }
 0x6e2   : > { %3232 = vrcp.f32 %v1899_v58  ;;  %v1961_v51 = vpack.c.bf16 %v1949_v7, %v1948_v5 }
 0x6e3   : > { %3234 = vrcp.f32 %v2243_v55  ;;  %v2241_v16 = vpop.xlane.xlu0 %2240  ;;  %v2302_v18 = vpack.c.bf16 %v2291_v34, %v2290_v62 }
 0x6e4   : > { %v1895_v31 = vpop.xlane.xlu1 %1894 }
 0x6e5   : > { %v3221_v52 = vpop.eup %3220 }
 0x6e6   : > { %v3223_v14 = vpop.eup %3222  ;;  %2856 = vmatpush3.bf16.xpose.msra.mxu1 %v1961_v51  ;;  %v1947_v1 = vmul.f32 %v3221_v52, %v4322_v23 }
 0x6e7   : > { %v3225_v21 = vpop.eup %3224  ;;  %2892 = vmatpush3.bf16.xpose.msra.mxu0 %v2302_v18  ;;  %v1897_v37 = vpop.xlane.xlu0 %1896  ;;  %2857 = vmatprep.subr.bf16.mxu1 %v4499_v32  ;;  %v2289_v25 = vmul.f32 %v3223_v14, %v4314_v53 }
 0x6e8   : > { %v3227_v27 = vpop.eup %3226  ;;  %3236 = vrcp.f32 %v1897_v37  ;;  %v2235_v13 = vpop.xlane.xlu1 %2234  ;;  %2893 = vmatprep.subr.bf16.mxu0 %v4499_v32  ;;  %v1946_v29 = vmul.f32 %v3225_v21, %v4317_v59 }
 0x6e9   : > { %3238 = vrcp.f32 %v2241_v16  ;;  %v2288_v28 = vmul.f32 %v3227_v27, %v4309_v57 }
 0x6ea   : > { %3240 = vrcp.f32 %v1895_v31  ;;  %v1960_v33 = vpack.c.bf16 %v1947_v1, %v1946_v29 }
 0x6eb   : > { %3242 = vrcp.f32 %v2239_v11  ;;  %v2301_v20 = vpack.c.bf16 %v2289_v25, %v2288_v28  ;;  %v2237_v56 = vpop.xlane.xlu0 %2236 }
 0x6ec   : > { %v729_v24 = vpop.permute.xlu1 %728  ;;  %3244 = vrcp.f32 %v2237_v56 }
 0x6ed   : > { %v3229_v61 = vpop.eup %3228  ;;  %v769_v63 = vadd.f32 %v4506_v30, %v729_v24  ;;  %3246 = vrcp.f32 %v2235_v13 }
 0x6ee   : > { %v3231_v43 = vpop.eup %3230  ;;  %2858 = vmatpush3.bf16.xpose.msra.mxu1 %v1960_v33  ;;  %v1945_v59 = vmul.f32 %v3229_v61, %v4334_v26 }
 0x6ef   : > { %v3233_v42 = vpop.eup %3232  ;;  %v797_v23 = vpack.c.bf16 %v769_v63, %v769_v63  ;;  %2894 = vmatpush3.bf16.xpose.msra.mxu0 %v2301_v20  ;;  %2859 = vmatprep.subr.bf16.mxu1 %v4499_v32  ;;  %v2287_v57 = vmul.f32 %v3231_v43, %v4328_v41 }
 0x6f0   : > { %v3235_v53 = vpop.eup %3234  ;;  %2895 = vmatprep.subr.bf16.mxu0 %v4499_v32  ;;  %v1944_v9 = vmul.f32 %v3233_v42, %v4330_v48  ;;  %v2356_v62 = vpop.permute.xlu1 %2355 }
 0x6f1   : > { %799 = vst [vmem:[#allocation4 + $0x2] sm:$0x1] %v797_v23  ;;  %v2286_v50 = vmul.f32 %v3235_v53, %v4324_v44 }
 0x6f2   : > { %v1959_v47 = vpack.c.bf16 %v1945_v59, %v1944_v9 }
 0x6f3   : > { %v911_v54 = vpop.permute.xlu0 %910  ;;  %v2300_v55 = vpack.c.bf16 %v2287_v57, %v2286_v50 }
 0x6f4   : > { %v951_v45 = vadd.f32 %v4507_v35, %v911_v54 }
 0x6f5   : > { %v3237_v8 = vpop.eup %3236 }
 0x6f6   : > { %v3239_v46 = vpop.eup %3238  ;;  %v979_v6 = vpack.c.bf16 %v951_v45, %v951_v45  ;;  %2860 = vmatpush3.bf16.xpose.msra.mxu1 %v1959_v47  ;;  %v1943_v41 = vmul.f32 %v3237_v8, %v4346_v38 }
 0x6f7   : > { %v3241_v0 = vpop.eup %3240  ;;  %2896 = vmatpush3.bf16.xpose.msra.mxu0 %v2300_v55  ;;  %2861 = vmatprep.subr.bf16.mxu1 %v4499_v32  ;;  %v2285_v44 = vmul.f32 %v3239_v46, %v4340_v60 }
 0x6f8   : > { %v3243_v26 = vpop.eup %3242  ;;  %981 = vst [vmem:[#allocation4 + $0x3] sm:$0x1] %v979_v6  ;;  %2897 = vmatprep.subr.bf16.mxu0 %v4499_v32  ;;  %v1942_v48 = vmul.f32 %v3241_v0, %v4342_v4  ;;  %v1967_v2 = vld [vmem:[#allocation4 + $0x2] sm:$0x1] }
 0x6f9   : > { %v2284_v49 = vmul.f32 %v3243_v26, %v4336_v10  ;;  %v3245_v15 = vpop.eup %3244 }
 0x6fa   : > { %v1958_v22 = vpack.c.bf16 %v1943_v41, %v1942_v48  ;;  %v3247_v12 = vpop.eup %3246  ;;  %v2283_v40 = vmul.f32 %v3245_v15, %v4352_v3 }
 0x6fb   : > { %v2299_v58 = vpack.c.bf16 %v2285_v44, %v2284_v49  ;;  %v2282_v38 = vmul.f32 %v3247_v12, %v4348_v39 }
 0x6fd   : > { %v2298_v60 = vpack.c.bf16 %v2283_v40, %v2282_v38 }
 0x6fe   : > { %2862 = vmatpush3.bf16.xpose.msra.mxu1 %v1958_v22 }
 0x6ff   : > { %2898 = vmatpush3.bf16.xpose.msra.mxu0 %v2299_v58  ;;  %2905 = vmatprep.subr.bf16.mxu1 %v4499_v32  ;;  %v2307_v10 = vld [vmem:[#allocation4 + $0x3] sm:$0x1] }
 0x700   : > { %2899 = vmatprep.subr.bf16.mxu0 %v4499_v32 }
 0x705   : > { %2864 = vmatmul.mubr.bf16.vlgmr.msra.gmra.mxu1 %v1967_v2 }
 0x706   : > { %2907 = vmatprep.mubr.msk.bf16.mxu1 %vm3327_vm0, %v4499_v32  ;;  %v2349_v32 = vld [vmem:[%s4474_s3] sm:$0xf] }
 0x707   : > { %2900 = vmatpush3.bf16.xpose.msra.mxu0 %v2298_v60 }
 0x70e   : > { %2902 = vmatmul.mubr.bf16.vlgmr.msra.gmra.mxu0 %v2307_v10 }
 0x7c5   : > { %v2002_v4 = vpop.f32.mrf.mxu1 }
 0x7c6   : > { %2008 = vst [vmem:[#allocation5 + $0x4] sm:$0x3] %v2002_v4 }
 0x7c7   : > { %v2865_v19 = vpop.f32.mrf.mxu1 }
 0x7c9   : > { %v2005_v36 = vpop.f32.mrf.mxu1 }
 0x7cb   : > { %v2866_v17 = vpop.f32.mrf.mxu1 }
 0x7ce   : > { %v2342_v11 = vpop.f32.mrf.mxu0 }
 0x7cf   : > { %2348 = vst [vmem:[#allocation5 + $0x6] sm:$0x3] %v2342_v11 }
 0x7d0   : > { %v2903_v3 = vpop.f32.mrf.mxu0 }
 0x7d2   : > { %v2345_v39 = vpop.f32.mrf.mxu0 }
 0x7d4   : > { %v2904_v7 = vpop.f32.mrf.mxu0 }
 0x7d6   : > { %v2350_v34 = vld [vmem:[#allocation5] sm:$0xff] }
 0x7d7   : > { %v2351_v5 = vpack.c.bf16 %v2350_v34, %v2350_v34 }
 0x7d9   : > { %v2364_v16 = vsel %vm264_vm1, %v2351_v5, 0 }
 0x7da   : > { %2906 = vmatpush3.bf16.msra.mxu1 %v2364_v16 }
 0x7dd   : > { %2908 = vmatmul.mubr.msk.bf16.vlgmr.msra.gmra.mxu1 %vm260_vm2, %v2349_v32 }
 0x89d   : > { %v2400_v31 = vpop.f32.mrf.mxu1 }
 0x89e   : > { %v2401_v51 = vadd.f32 %v2400_v31, %v2356_v62 }
 0x89f   : > { %v2909_v52 = vpop.f32.mrf.mxu1 }
 0x8a0   : > { %2406 = vst [vmem:[%s238_s7] sm:$0xff] %v2401_v51 }
 0x8a1   : > { %v2403_v18 = vpop.f32.mrf.mxu1 }
 0x8a2   : > { %3261 = shalt.err (!%p3258_p5)
}
 0x8a3   : > { %s3262_s16 = scalar_lea.hbm %s4425_s11, 128  ;;  %s3266_s25 = scalar_lea.hbm %s4476_s5, 256 }
 0x8a4   : > { %p3263_p6 = scmp.ne.s32.totalorder %s4425_s11, %s3262_s16  ;;  %p3267_p10 = scmp.lt.s32.totalorder %s4425_s11, %s4476_s5 }
 0x8a5   : > { %p3268_p11 = scmp.lt.s32.totalorder %s3266_s25, %s3262_s16 }
 0x8a6   : > { %p3264_p7 = pnand %p3263_p6, %p3401_p4 }
 0x8a7   : > { %p3269_p12 = por %p3268_p11, %p3267_p10 }
 0x8a8   : > { %p3265_p9 = pneg %p3264_p7 }
 0x8aa   : > { %p3270_p13 = pnand %p3269_p12, %p3265_p9 }
 0x8ac   : > { %3273 = shalt.err (!%p3270_p13)
}
 0x8ad   : > { %2915 = dma.vmem_to_hbm [thread:$0]  (%p3401_p4), %s4427_s8, 128, %s4425_s11, %s2408_s12   ;;  %v2910_v14 = vpop.f32.mrf.mxu1 }
 0x8ae PF: > { %p2921_p0 = scmp.ge.s32.totalorder %s3324_s23, 2  ;;  %s2435_s7 = sand.u32 1, %s3304_s18  }
 0x8af   : > { %s2436_s9 = scalar_lea.sflag [#allocation7], %s2435_s7 }
 0x8b0   : > { %p2918_p1 = pnand %p2921_p0, %p3408_p8 }
 0x8b2   : > { %p2919_p2 = pneg %p2918_p1 }
 0x8b4   : > { %3299 = dma.done.wait (%p2919_p2), %s2436_s9, 128  }
 0x8b5   : > { %3301 = vsyncadd (%p2919_p2), %s2436_s9, 4294967168  ;;  %s18_s23 = sadd.s32 1, %s3324_s23   ;;  %s4508_s18 = smov %s3308_s19 }
 0x8b6   : > { %p15_p3 = scmp.ge.s32.totalorder %s18_s23, 4   ;;  %s4509_s19 = smov %s3312_s20 }
 0x8b7   : > { %s4510_s20 = smov %s3414_s6  ;;  %s4511_s21 = smov %s3320_s22 }
 0x8b8   : > { %s4512_s22 = smov %s4514_s26  ;;  %17 = sbr.rel (!%p15_p3) target bundleno = 4 (0x4), region = 120 }
 0x8bd   :  { %2441 = vsyncpa [#allocation7], 1 }
 0x8be   :  { %2443 = vsyncpa [#allocation7 + $0x1], 1 }

</bundles_post_ra>
